<compile_context>
chip_gen: v6e
topology: v6e:2x2x1
jax: 0.10.0
libtpu: 0.0.40
codegen_flags: <defaults>
</compile_context>

<pallas_src>
import functools
import math

import jax
import jax.numpy as jnp
from jax import lax
from jax.experimental import pallas as pl
from jax.experimental.pallas import tpu as pltpu


def _round_up(x, m):
    return (x + m - 1) // m * m


def _pad2d(x, rows, cols):
    r, c = x.shape
    return jnp.pad(x, ((0, rows - r), (0, cols - c)))


def _sage_layer_kernel(a_ref, hs_ref, hn_ref, inv_ref, wh_ref, wc_ref, b_ref,
                       o_ref, acc_ref, *, apply_relu):
    k = pl.program_id(1)

    @pl.when(k == 0)
    def _init():
        acc_ref[...] = jnp.zeros_like(acc_ref)

    # Accumulate neighbor sum: acc += A[i, k] @ h[k]   (bf16 MXU, f32 accumulate)
    acc_ref[...] += jnp.dot(a_ref[...], hn_ref[...],
                            preferred_element_type=jnp.float32)

    @pl.when(k == pl.num_programs(1) - 1)
    def _finalize():
        # Mean aggregation: multiply by safe 1/in_degree (0 for isolated nodes).
        c = acc_ref[...] * inv_ref[...]                       # [TM, Fi] f32

        # Linear(concat([h, c])) == h @ W_h + c @ W_c + b
        # TODO(synk): when f_out << f_in one could pre-transform h with W_c before
        # aggregation (matmul associativity); with 128-lane padding all widths here
        # are equal so the order is a wash.
        z = jnp.dot(hs_ref[...], wh_ref[...],
                    preferred_element_type=jnp.float32)
        z = z + jnp.dot(c.astype(jnp.bfloat16), wc_ref[...],
                        preferred_element_type=jnp.float32)
        z = z + b_ref[...]

        # F.normalize(z, p=2, dim=1), eps=1e-12  ->  z * rsqrt(max(sumsq, eps^2))
        ssq = jnp.sum(z * z, axis=1, keepdims=True)
        z = z * lax.rsqrt(jnp.maximum(ssq, 1e-24))

        if apply_relu:
            z = jnp.maximum(z, 0.0)

        o_ref[...] = z.astype(o_ref.dtype)


def graphsage_layer(a, inv_deg, h, w_h, w_c, b, *, apply_relu,
                    tile_m=256, tile_k=256):
    """One GraphSageLayer on padded, bf16 inputs.

    a: [Np, Np] bf16 (0/1), inv_deg: [Np, 1] f32, h: [Np, Fi_p] bf16,
    w_h/w_c: [Fi_p, Fo_p] bf16 (zero-padded), b: [1, Fo_p] f32 (zero-padded).
    """
    n_pad, fi_p = h.shape
    fo_p = w_h.shape[1]
    assert n_pad % tile_m == 0 and n_pad % tile_k == 0

    grid = (n_pad // tile_m, n_pad // tile_k)
    kernel = functools.partial(_sage_layer_kernel, apply_relu=apply_relu)

    flops = 2 * n_pad * n_pad * fi_p + 2 * 2 * n_pad * fi_p * fo_p
    bytes_accessed = (a.size * a.dtype.itemsize
                      + 2 * h.size * h.dtype.itemsize
                      + inv_deg.size * 4
                      + (w_h.size + w_c.size) * 2
                      + b.size * 4
                      + n_pad * fo_p * 4)

    return pl.pallas_call(
        kernel,
        out_shape=jax.ShapeDtypeStruct((n_pad, fo_p), jnp.float32),
        grid=grid,
        in_specs=[
            pl.BlockSpec((tile_m, tile_k), lambda i, k: (i, k)),   # A tile
            pl.BlockSpec((tile_m, fi_p), lambda i, k: (i, 0)),     # h (self rows)
            pl.BlockSpec((tile_k, fi_p), lambda i, k: (k, 0)),     # h (neighbor rows)
            pl.BlockSpec((tile_m, 1), lambda i, k: (i, 0)),        # 1/in_degree
            pl.BlockSpec((fi_p, fo_p), lambda i, k: (0, 0)),       # W_h
            pl.BlockSpec((fi_p, fo_p), lambda i, k: (0, 0)),       # W_c
            pl.BlockSpec((1, fo_p), lambda i, k: (0, 0)),          # bias
        ],
        out_specs=pl.BlockSpec((tile_m, fo_p), lambda i, k: (i, 0)),
        scratch_shapes=[pltpu.VMEM((tile_m, fi_p), jnp.float32)],
        compiler_params=pltpu.CompilerParams(
            dimension_semantics=("parallel", "arbitrary"),
            vmem_limit_bytes=32 * 1024 * 1024),
        cost_estimate=pl.CostEstimate(flops=flops,
                                      transcendentals=n_pad,
                                      bytes_accessed=bytes_accessed),
    )(a, h, h, inv_deg, w_h, w_c, b)


def init_bundler_params(key, in_feats, out_feats):
    """nn.Linear(2*in_feats, out_feats) with xavier_uniform_(gain=relu)."""
    k_w, k_b = jax.random.split(key)
    fan_in = 2 * in_feats
    fan_out = out_feats
    gain = jnp.sqrt(2.0)  # nn.init.calculate_gain('relu')
    bound_w = gain * jnp.sqrt(6.0 / (fan_in + fan_out))
    # torch weight is [out, 2*in]; stored transposed as [2*in, out]
    w = jax.random.uniform(k_w, (fan_in, fan_out), jnp.float32,
                           -bound_w, bound_w)
    bound_b = 1.0 / jnp.sqrt(fan_in)
    b = jax.random.uniform(k_b, (1, fan_out), jnp.float32, -bound_b, bound_b)
    # split into "self" (first in_feats rows) and "neighbor" halves
    return w[:in_feats, :], w[in_feats:, :], b


def graphsage_forward(adj, features, params, *, tile_m=256, tile_k=256):
    """params: list of (w_h, w_c, b, apply_relu).  adj[i, j]=1 iff edge j->i."""
    n, f_in0 = features.shape
    n_pad = _round_up(n, math.lcm(tile_m, tile_k))

    # Safe 1/in_degree computed once and reused by every layer.
    deg = jnp.sum(adj, axis=1, keepdims=True)
    inv_deg = jnp.where(deg > 0, 1.0 / jnp.maximum(deg, 1.0), 0.0)

    a_p = _pad2d(adj.astype(jnp.bfloat16), n_pad, n_pad)       # 0/1 exact in bf16
    inv_p = _pad2d(inv_deg.astype(jnp.float32), n_pad, 1)

    h = _pad2d(features.astype(jnp.float32), n_pad, _round_up(f_in0, 128))

    # TODO(synk): dropout is identity in eval mode; training dropout, the optional
    # BatchNorm path (bn=False here) and maxpool/LSTM aggregators are not implemented.
    for (w_h, w_c, b, apply_relu) in params:
        fi, fo = w_h.shape
        fi_p, fo_p = _round_up(fi, 128), _round_up(fo, 128)
        assert h.shape == (n_pad, fi_p)
        wh_p = _pad2d(w_h, fi_p, fo_p).astype(jnp.bfloat16)
        wc_p = _pad2d(w_c, fi_p, fo_p).astype(jnp.bfloat16)
        b_p = _pad2d(b, 1, fo_p).astype(jnp.float32)
        h = graphsage_layer(a_p, inv_p, h.astype(jnp.bfloat16),
                            wh_p, wc_p, b_p, apply_relu=apply_relu,
                            tile_m=tile_m, tile_k=tile_k)

    f_out_last = params[-1][0].shape[1]
    return h[:n, :f_out_last]


def _reference_forward(adj, features, params):
    """Pure-jnp reference mirroring the kernel's bf16 operand casts."""
    deg = jnp.sum(adj, axis=1, keepdims=True)
    inv_deg = jnp.where(deg > 0, 1.0 / jnp.maximum(deg, 1.0), 0.0)
    a16 = adj.astype(jnp.bfloat16)
    h = features
    for (w_h, w_c, b, act) in params:
        h16 = h.astype(jnp.bfloat16)
        c = jnp.dot(a16, h16, preferred_element_type=jnp.float32) * inv_deg
        z = (jnp.dot(h16, w_h.astype(jnp.bfloat16),
                     preferred_element_type=jnp.float32)
             + jnp.dot(c.astype(jnp.bfloat16), w_c.astype(jnp.bfloat16),
                       preferred_element_type=jnp.float32)
             + b)
        ssq = jnp.sum(z * z, axis=1, keepdims=True)
        z = z * lax.rsqrt(jnp.maximum(ssq, 1e-24))
        if act:
            z = jnp.maximum(z, 0.0)
        h = z
    return h


if __name__ == "__main__":
    # N=300 nodes (pads to 512 -> 2x2 grid of 256-tiles), in_feats=8,
    # n_hidden=32, n_classes=4, n_layers=2
    #   -> 3 GraphSageLayers: 8->32 (relu), 32->32 (relu), 32->4 (no act)
    N, in_feats, n_hidden, n_classes, n_layers = 300, 8, 32, 4, 2

    key = jax.random.PRNGKey(0)
    k_feat, k_adj, *k_layers = jax.random.split(key, 2 + n_layers + 1)

    features = jax.random.normal(k_feat, (N, in_feats), jnp.float32)

    # Random directed graph; node 0 intentionally has ZERO in-neighbors to
    # exercise the safe-reciprocal mean path (no NaN).
    adj = (jax.random.uniform(k_adj, (N, N)) < 0.1).astype(jnp.float32)
    adj = adj.at[0, :].set(0.0)

    dims = [(in_feats, n_hidden, True)]
    dims += [(n_hidden, n_hidden, True) for _ in range(n_layers - 1)]
    dims += [(n_hidden, n_classes, False)]
    params = []
    for (fi, fo, act), kl in zip(dims, k_layers):
        w_h, w_c, b = init_bundler_params(kl, fi, fo)
        params.append((w_h, w_c, b, act))

    out = graphsage_forward(adj, features, params)
    out = jax.block_until_ready(out)
    assert out.shape == (N, n_classes), out.shape
    assert bool(jnp.all(jnp.isfinite(out)))

    ref = _reference_forward(adj, features, params)
    assert bool(jnp.allclose(out, ref, atol=5e-2, rtol=5e-2)), (
        float(jnp.max(jnp.abs(out - ref))))

    print("KERNEL_OK")
</pallas_src>

<mosaic_0001>
module attributes {stable_mosaic.version = 11 : i64} {
  func.func @_sage_layer_kernel(%arg0: i32, %arg1: i32, %arg2: memref<256x256xbf16, #tpu.memory_space<vmem>>, %arg3: memref<256x128xbf16, #tpu.memory_space<vmem>>, %arg4: memref<256x128xbf16, #tpu.memory_space<vmem>>, %arg5: memref<256x1xf32, #tpu.memory_space<vmem>>, %arg6: memref<128x128xbf16, #tpu.memory_space<vmem>>, %arg7: memref<128x128xbf16, #tpu.memory_space<vmem>>, %arg8: memref<1x128xf32, #tpu.memory_space<vmem>>, %arg9: memref<256x128xf32, #tpu.memory_space<vmem>>, %arg10: memref<256x128xf32, #tpu.memory_space<vmem>>) attributes {dimension_semantics = [#tpu.dimension_semantics<parallel>, #tpu.dimension_semantics<arbitrary>], iteration_bounds = array<i64: 2, 2>, scalar_prefetch = 0 : i64, scratch_operands = 1 : i64, tpu.core_type = #tpu.core_type<tc>, window_params = [{transform_indices = @transform_0, window_bounds = array<i64: 256, 256>}, {transform_indices = @transform_1, window_bounds = array<i64: 256, 128>}, {transform_indices = @transform_2, window_bounds = array<i64: 256, 128>}, {transform_indices = @transform_3, window_bounds = array<i64: 256, 1>}, {pipeline_mode = #tpu.pipeline_mode<synchronous>, transform_indices = @transform_4, window_bounds = array<i64: 128, 128>}, {pipeline_mode = #tpu.pipeline_mode<synchronous>, transform_indices = @transform_5, window_bounds = array<i64: 128, 128>}, {pipeline_mode = #tpu.pipeline_mode<synchronous>, transform_indices = @transform_6, window_bounds = array<i64: 1, 128>}, {transform_indices = @transform_7, window_bounds = array<i64: 256, 128>}]} {
    %c0_i32 = arith.constant 0 : i32
    %0 = arith.cmpi eq, %arg1, %c0_i32 : i32
    %1 = arith.extui %0 : i1 to i32
    %c0_i32_0 = arith.constant 0 : i32
    %2 = arith.cmpi ne, %1, %c0_i32_0 : i32
    scf.if %2 {
      %cst_9 = arith.constant 0.000000e+00 : f32
      %12 = vector.broadcast %cst_9 : f32 to vector<256x128xf32>
      %c0_10 = arith.constant 0 : index
      %c0_11 = arith.constant 0 : index
      %13 = vector.load %arg10[%c0_10, %c0_11] : memref<256x128xf32, #tpu.memory_space<vmem>>, vector<256x128xf32>
      tpu.vector_store %arg10[%c0_10, %c0_11], %12 {strides = array<i32>} : memref<256x128xf32, #tpu.memory_space<vmem>>, vector<256x128xf32>,
    } else {
    }
    %c0 = arith.constant 0 : index
    %c0_1 = arith.constant 0 : index
    %3 = vector.load %arg10[%c0, %c0_1] : memref<256x128xf32, #tpu.memory_space<vmem>>, vector<256x128xf32>
    %c0_2 = arith.constant 0 : index
    %c0_3 = arith.constant 0 : index
    %4 = vector.load %arg2[%c0_2, %c0_3] : memref<256x256xbf16, #tpu.memory_space<vmem>>, vector<256x256xbf16>
    %c0_4 = arith.constant 0 : index
    %c0_5 = arith.constant 0 : index
    %5 = vector.load %arg4[%c0_4, %c0_5] : memref<256x128xbf16, #tpu.memory_space<vmem>>, vector<256x128xbf16>
    %cst = arith.constant dense<0.000000e+00> : vector<256x128xf32>
    %6 = tpu.matmul %4, %5, %cst {dimension_numbers = #tpu.dot_dimension_numbers<[1], [0], [0], [1], [0, 0, 1, 1], [], []>} : vector<256x256xbf16>, vector<256x128xbf16>, vector<256x128xf32> -> vector<256x128xf32>
    %7 = arith.addf %3, %6 : vector<256x128xf32>
    %c0_6 = arith.constant 0 : index
    %c0_7 = arith.constant 0 : index
    %8 = vector.load %arg10[%c0_6, %c0_7] : memref<256x128xf32, #tpu.memory_space<vmem>>, vector<256x128xf32>
    tpu.vector_store %arg10[%c0_6, %c0_7], %7 {strides = array<i32>} : memref<256x128xf32, #tpu.memory_space<vmem>>, vector<256x128xf32>,
    %c1_i32 = arith.constant 1 : i32
    %9 = arith.cmpi eq, %arg1, %c1_i32 : i32
    %10 = arith.extui %9 : i1 to i32
    %c0_i32_8 = arith.constant 0 : i32
    %11 = arith.cmpi ne, %10, %c0_i32_8 : i32
    scf.if %11 {
      %c0_9 = arith.constant 0 : index
      %c0_10 = arith.constant 0 : index
      %12 = vector.load %arg10[%c0_9, %c0_10] : memref<256x128xf32, #tpu.memory_space<vmem>>, vector<256x128xf32>
      %c0_11 = arith.constant 0 : index
      %c0_12 = arith.constant 0 : index
      %13 = vector.load %arg5[%c0_11, %c0_12] : memref<256x1xf32, #tpu.memory_space<vmem>>, vector<256x1xf32>
      %14 = vector.broadcast %13 : vector<256x1xf32> to vector<256x128xf32>
      %15 = arith.mulf %12, %14 : vector<256x128xf32>
      %c0_13 = arith.constant 0 : index
      %c0_14 = arith.constant 0 : index
      %16 = vector.load %arg3[%c0_13, %c0_14] : memref<256x128xbf16, #tpu.memory_space<vmem>>, vector<256x128xbf16>
      %c0_15 = arith.constant 0 : index
      %c0_16 = arith.constant 0 : index
      %17 = vector.load %arg6[%c0_15, %c0_16] : memref<128x128xbf16, #tpu.memory_space<vmem>>, vector<128x128xbf16>
      %cst_17 = arith.constant dense<0.000000e+00> : vector<256x128xf32>
      %18 = tpu.matmul %16, %17, %cst_17 {dimension_numbers = #tpu.dot_dimension_numbers<[1], [0], [0], [1], [0, 0, 1, 1], [], []>} : vector<256x128xbf16>, vector<128x128xbf16>, vector<256x128xf32> -> vector<256x128xf32>
      %19 = arith.truncf %15 : vector<256x128xf32> to vector<256x128xbf16>
      %c0_18 = arith.constant 0 : index
      %c0_19 = arith.constant 0 : index
      %20 = vector.load %arg7[%c0_18, %c0_19] : memref<128x128xbf16, #tpu.memory_space<vmem>>, vector<128x128xbf16>
      %cst_20 = arith.constant dense<0.000000e+00> : vector<256x128xf32>
      %21 = tpu.matmul %19, %20, %cst_20 {dimension_numbers = #tpu.dot_dimension_numbers<[1], [0], [0], [1], [0, 0, 1, 1], [], []>} : vector<256x128xbf16>, vector<128x128xbf16>, vector<256x128xf32> -> vector<256x128xf32>
      %22 = arith.addf %18, %21 : vector<256x128xf32>
      %c0_21 = arith.constant 0 : index
      %c0_22 = arith.constant 0 : index
      %23 = vector.load %arg8[%c0_21, %c0_22] : memref<1x128xf32, #tpu.memory_space<vmem>>, vector<1x128xf32>
      %24 = vector.broadcast %23 : vector<1x128xf32> to vector<256x128xf32>
      %25 = arith.addf %22, %24 : vector<256x128xf32>
      %26 = arith.mulf %25, %25 : vector<256x128xf32>
      %cst_23 = arith.constant dense<0.000000e+00> : vector<256xf32>
      %27 = vector.multi_reduction <add>, %26, %cst_23 [1] : vector<256x128xf32> to vector<256xf32>
      %28 = vector.shape_cast %27 : vector<256xf32> to vector<256x1xf32>
      %cst_24 = arith.constant 1.000000e-24 : f32
      %29 = vector.broadcast %cst_24 : f32 to vector<256x1xf32>
      %30 = arith.maximumf %28, %29 : vector<256x1xf32>
      %31 = math.rsqrt %30 : vector<256x1xf32>
      %32 = vector.broadcast %31 : vector<256x1xf32> to vector<256x128xf32>
      %33 = arith.mulf %25, %32 : vector<256x128xf32>
      %cst_25 = arith.constant 0.000000e+00 : f32
      %34 = vector.broadcast %cst_25 : f32 to vector<256x128xf32>
      %35 = arith.maximumf %33, %34 : vector<256x128xf32>
      %c0_26 = arith.constant 0 : index
      %c0_27 = arith.constant 0 : index
      %36 = vector.load %arg9[%c0_26, %c0_27] : memref<256x128xf32, #tpu.memory_space<vmem>>, vector<256x128xf32>
      tpu.vector_store %arg9[%c0_26, %c0_27], %35 {strides = array<i32>} : memref<256x128xf32, #tpu.memory_space<vmem>>, vector<256x128xf32>,
    } else {
    }
    return
  }
  func.func @transform_0(%arg0: i32, %arg1: i32) -> (i32, i32) {
    %c0_i32 = arith.constant 0 : i32
    return %arg0, %arg1 : i32, i32
  }
  func.func @transform_1(%arg0: i32, %arg1: i32) -> (i32, i32) {
    %c0_i32 = arith.constant 0 : i32
    %c0_i32_0 = arith.constant 0 : i32
    return %arg0, %c0_i32 : i32, i32
  }
  func.func @transform_2(%arg0: i32, %arg1: i32) -> (i32, i32) {
    %c0_i32 = arith.constant 0 : i32
    %c0_i32_0 = arith.constant 0 : i32
    return %arg1, %c0_i32 : i32, i32
  }
  func.func @transform_3(%arg0: i32, %arg1: i32) -> (i32, i32) {
    %c0_i32 = arith.constant 0 : i32
    %c0_i32_0 = arith.constant 0 : i32
    return %arg0, %c0_i32 : i32, i32
  }
  func.func @transform_4(%arg0: i32, %arg1: i32) -> (i32, i32) {
    %c0_i32 = arith.constant 0 : i32
    %c0_i32_0 = arith.constant 0 : i32
    %c0_i32_1 = arith.constant 0 : i32
    return %c0_i32, %c0_i32_0 : i32, i32
  }
  func.func @transform_5(%arg0: i32, %arg1: i32) -> (i32, i32) {
    %c0_i32 = arith.constant 0 : i32
    %c0_i32_0 = arith.constant 0 : i32
    %c0_i32_1 = arith.constant 0 : i32
    return %c0_i32, %c0_i32_0 : i32, i32
  }
  func.func @transform_6(%arg0: i32, %arg1: i32) -> (i32, i32) {
    %c0_i32 = arith.constant 0 : i32
    %c0_i32_0 = arith.constant 0 : i32
    %c0_i32_1 = arith.constant 0 : i32
    return %c0_i32, %c0_i32_0 : i32, i32
  }
  func.func @transform_7(%arg0: i32, %arg1: i32) -> (i32, i32) {
    %c0_i32 = arith.constant 0 : i32
    %c0_i32_0 = arith.constant 0 : i32
    return %arg0, %c0_i32 : i32, i32
  }
}

</mosaic_0001>

<bundles_post_ra>
// kernel: tpu_custom_call.1
= control target key start
LH: loop header
LB: loop body
LE: loop exit
PB: predicated region body
PF: predicated region fallthrough
CT: control target
= control target key end

     0   :  { %s3882_s0 = inlined_call_operand.hbm [shape: bf16[512,512], index: 0, kind: input, shape index: {}]   ;;  %s3883_s1 = inlined_call_operand.vmem [shape: bf16[512,128], index: 1, kind: input, shape index: {}]   ;;  %s3884_s2 = inlined_call_operand.vmem [shape: bf16[512,128], index: 2, kind: input, shape index: {}]   ;;  %s3885_s3 = inlined_call_operand.vmem [shape: f32[512,1], index: 3, kind: input, shape index: {}]   ;;  %s3886_s4 = inlined_call_operand.hbm [shape: bf16[128,128], index: 4, kind: input, shape index: {}]   ;;  %s3887_s5 = inlined_call_operand.hbm [shape: bf16[128,128], index: 5, kind: input, shape index: {}]   ;;  %s3888_s6 = inlined_call_operand.vmem [shape: f32[1,128], index: 6, kind: input, shape index: {}]   ;;  %s3889_s7 = inlined_call_operand.hbm [shape: f32[512,128], index: 7, kind: output, shape index: {}]  }
   0x1   :  { %3905 = sst [smem:[#allocation20_spill]] %s3883_s1 }
   0x2   :  { %3906 = sst [smem:[#allocation21_spill]] %s3884_s2 }
   0x3   :  { %3907 = sst [smem:[#allocation22_spill]] %s3885_s3 }
   0x4   :  { %3908 = sst [smem:[#allocation23_spill]] %s3886_s4 }
   0x5   :  { %3909 = sst [smem:[#allocation24_spill]] %s3887_s5 }
   0x6   :  { %3910 = sst [smem:[#allocation25_spill]] %s3888_s6 }
   0x7   :  { %3911 = sst [smem:[#allocation26_spill]] %s3889_s7 }
   0x8   :  { %12 = vsyncpa [#allocation4], 0 }
   0x9   :  { %14 = vsyncpa [#allocation4 + $0x1], 0 }
   0xa   :  { %15 = vsyncpa [#allocation7], 0 }
   0xb   :  { %16 = vsyncpa [#allocation5], 0 }
   0xc   :  { %18 = vsyncpa [#allocation5 + $0x1], 0  ;;  %s3268_s24 = smov 0   ;;  %s3270_s25 = smov 0  }
   0xd   :  { %s3272_s26 = smov 0   ;;  %s3274_s27 = smov 0  }
   0xe   :  { %s3276_s28 = smov 0   ;;  %s3278_s29 = smov 0  }
   0xf   :  { %s3280_s30 = smov 0   ;;  %s3282_s8 = smov 0  }
  0x10   :  { %s3284_s9 = smov 0   ;;  %s3286_s10 = smov 0  }
  0x11   :  { %s3288_s11 = smov 0  }
  0x12 LB: > { %3912 = sst [smem:[#allocation13_spill]] %s3173_s24  ;;  %s2331_s12 = sadd.s32 4294967295, %s3213_s11   ;;  %s3213_s11 = sphi %s3288_s11, %s24_s11   ;;  %s3209_s10 = sphi %s3286_s10, %s3958_s10   ;;  %s3205_s9 = sphi %s3284_s9, %s3957_s9   ;;  %s3201_s8 = sphi %s3282_s8, %s3956_s8   ;;  %s3197_s30 = sphi %s3280_s30, %s3947_s30   ;;  %s3193_s29 = sphi %s3278_s29, %s3955_s29   ;;  %s3189_s28 = sphi %s3276_s28, %s3954_s28   ;;  %s3185_s27 = sphi %s3274_s27, %s3953_s27   ;;  %s3181_s26 = sphi %s3272_s26, %s3952_s26   ;;  %s3177_s25 = sphi %s3270_s25, %s3951_s25   ;;  %s3173_s24 = sphi %s3268_s24, %s3950_s24  }
  0x13   : > { %3913 = sst [smem:[#allocation14_spill]] %s3197_s30  ;;  %s2332_s13 = sadd.s32 4294967294, %s3213_s11  }
  0x14   : > { %3914 = sst [smem:[#allocation15_spill]] %s3205_s9  ;;  %p52_p0 = scmp.ne.s32.totalorder %s3193_s29, %s3189_s28 }
  0x15   : > { %3915 = sst [smem:[#allocation16_spill]] %s3213_s11  ;;  %p53_p1 = scmp.eq.s32.totalorder %s3213_s11, 0 }
  0x16   : > { %p58_p2 = scmp.ne.s32.totalorder %s3189_s28, %s3185_s27  ;;  %p3328_p3 = scmp.eq.s32.totalorder %s2331_s12, 0 }
  0x17   : > { %p3333_p4 = por %p53_p1, %p52_p0  ;;  %p222_p5 = scmp.ne.s32.totalorder %s3181_s26, %s3177_s25 }
  0x18   : > { %s3916_s15 = scalar_select %p3328_p3, 1, 0 }
  0x19   : > { %p3341_p6 = por %p3328_p3, %p58_p2  ;;  %p223_p7 = scmp.eq.s32.totalorder %s2331_s12, 3 }
  0x1a   : > { %p228_p8 = scmp.ne.s32.totalorder %s3177_s25, %s3173_s24  ;;  %p229_p9 = scmp.eq.s32.totalorder %s2332_s13, 3 }
  0x1b   : > { %s3918_s18 = scalar_select %p3341_p6, 1, 0 }
  0x1c   : > { %p3347_p10 = por %p223_p7, %p222_p5  ;;  %p2333_p11 = scmp.ge.s32.totalorder %s3213_s11, 1 }
  0x1d   : > { %p3352_p12 = por %p229_p9, %p228_p8  ;;  %p236_p13 = scmp.lt.s32.totalorder %s3213_s11, 5 }
  0x1e   : > { %s3919_s19 = scalar_select %p3347_p10, 1, 0 }
  0x1f   : > { %s3921_s20 = scalar_select %p3352_p12, 1, 0 }
  0x20   : > { %3920 = sst [smem:[#allocation17_spill]] %s3919_s19  ;;  %p3357_p0 = pnand %p2333_p11, %p236_p13 }
  0x21   : > { %3922 = sst [smem:[#allocation18_spill]] %s3921_s20  ;;  %s3215_s22 = smov [#allocation6]  }
  0x22   : > { %s248_s23 = sshll.u32 %s3215_s22, 4  ;;  %p2727_p1 = pneg %p3357_p0  ;;  %s249_s23 = int_to_ptr.vmem [resolvable:$true] %s248_s23 }
  0x23   : > { %p2744_p2 = scmp.lt.s32.totalorder %s3213_s11, 4  ;;  %s3216_s13 = smov [#allocation8]  }
  0x24   : > { %p3366_p5 = pnand %p2727_p1, %p3328_p3  ;;  %s261_s14 = sshll.u32 %s3216_s13, 4  ;;  %s262_s14 = int_to_ptr.vmem [resolvable:$true] %s261_s14 }
  0x25   : > { %p3372_p7 = pnand %p2744_p2, %p3333_p4  ;;  %s3020_s22 = scalar_lea.vmem %s249_s23, 1024 }
  0x26   : > { %p3011_p8 = pneg %p3366_p5  ;;  %p3021_p9 = scmp.ne.s32.totalorder %s249_s23, %s3020_s22 }
  0x27   : > { %p3028_p1 = scmp.lt.s32.totalorder %s249_s23, %s249_s23  ;;  %p3029_p12 = scmp.lt.s32.totalorder %s3020_s22, %s3020_s22 }
  0x28   : > { %p3023_p11 = pnand %p3021_p9, %p3011_p8 }
  0x29   : > { %p3030_p10 = por %p3029_p12, %p3028_p1 }
  0x2a   : > { %p3024_p13 = pneg %p3023_p11 }
  0x2c   : > { %p3031_p3 = pnand %p3030_p10, %p3024_p13 }
  0x2e   : > { %3034 = shalt.err (!%p3031_p3)
}
  0x2f   : > { %s3217_s17 = smov 64   ;;  %s3218_s16 = smov 4  }
  0x30   : > { %s3926_s4 = sld [smem:[#allocation23_spill]]  ;;  %s3046_s24 = scalar_lea.vmem %s262_s14, 1024 }
  0x31   : > { %p3047_p4 = scmp.ne.s32.totalorder %s262_s14, %s3046_s24  ;;  %p3054_p11 = scmp.lt.s32.totalorder %s262_s14, %s262_s14 }
  0x32   : > { %p3055_p6 = scmp.lt.s32.totalorder %s3046_s24, %s3046_s24 }
  0x33   : > { %p3049_p2 = pnand %p3047_p4, %p3011_p8 }
  0x34   : > { %p3056_p12 = por %p3055_p6, %p3054_p11 }
  0x35   : > { %p3050_p9 = pneg %p3049_p2 }
  0x36   : > { %2730 = dma.hbm_to_vmem [thread:$0]  (!%p3366_p5), %s3926_s4, 1024, %s249_s23, [#allocation7], %s3217_s17, %s3217_s17, %s3218_s16  }
  0x37   : > { %p3057_p10 = pnand %p3056_p12, %p3050_p9 }
  0x39   : > { %3060 = shalt.err (!%p3057_p10)
}
  0x3a   : > { %s3927_s5 = sld [smem:[#allocation24_spill]]  ;;  %s33_s20 = sadd.s32 1, %s3205_s9 }
  0x3b   : > { %p34_p3 = scmp.ge.s32.totalorder %s33_s20, 2  ;;  %s36_s24 = sadd.s32 1, %s3209_s10 }
  0x3c   : > { %s278_s23 = sand.u32 1, %s3193_s29   ;;  %s2339_s13 = sshll.u32 %s3205_s9, 1 }
  0x3d   : > { %s3960_s20 = smov (%p34_p3, %s33_s20), 0  ;;  %s3962_s24 = smov (!%p34_p3, %s36_s24), %s3209_s10 }
  0x3e   : > { %3928 = sst [smem:[#allocation19_spill]] %s3960_s20  ;;  %s41_s11 = ssub.s32 %s3205_s9, %s3960_s20 }
  0x3f   : > { %p38_p6 = scmp.ge.s32.totalorder %s3962_s24, 2  ;;  %s2337_s27 = sshll.u32 %s278_s23, 8 }
  0x40   : > { %2733 = dma.hbm_to_vmem [thread:$0]  (!%p3366_p5), %s3927_s5, 1024, %s262_s14, [#allocation7], %s3217_s17, %s3217_s17, %s3218_s16  }
  0x41   : > { %s2441_s22 = sshll.u32 %s3209_s10, 7  ;;  %s3964_s24 = smov (%p38_p6, %s3962_s24), 0 }
  0x42   : > { %s289_s14 = sadd.s32 %s2441_s22, %s2339_s13  ;;  %s282_s16 = scalar_lea.vmem [#allocation3], %s2337_s27 }
  0x43   : > { %s292_s17 = sshll.u32 %s282_s16, 4  ;;  %s40_s4 = ssub.s32 %s3209_s10, %s3964_s24  ;;  %s293_s17 = int_to_ptr.vmem [resolvable:$true] %s292_s17 }
  0x44   : > { %s2341_s5 = sshll.u32 %s289_s14, 6  ;;  %s42_s7 = sor.u32 %s41_s11, %s40_s4 }
  0x45   : > { %p210_p5 = scmp.eq.s32.totalorder %s40_s4, 0  ;;  %p43_p8 = scmp.eq.s32.totalorder %s42_s7, 0 }
  0x46   : > { %s291_s2 = scalar_lea.hbm %s3882_s0, %s2341_s5  ;;  %s3929_s20 = sadd.s32 1, %s3181_s26 }
  0x47   : > { %s3414_s9 = scalar_select %p210_p5, %s3181_s26, %s3929_s20  }
  0x48   : > { %s3930_s3 = sadd.s32 1, %s3193_s29  ;;  %s279_s30 = scalar_lea.sflag [#allocation4], %s278_s23 }
  0x49   : > { %s3419_s1 = scalar_select %p43_p8, %s3193_s29, %s3930_s3  }
  0x4a   : > { %p3063_p13 = pneg %p3372_p7  ;;  %s3074_s13 = scalar_lea.vmem %s293_s17, 4096 }
  0x4b   : > { %p3075_p1 = scmp.ne.s32.totalorder %s293_s17, %s3074_s13  ;;  %s3219_s4 = smov [#allocation3]  }
  0x4c   : > { %s3079_s7 = sshll.u32 %s3219_s4, 4  ;;  %s3080_s7 = int_to_ptr.vmem [resolvable:$false] %s3079_s7 }
  0x4d   : > { %p3077_p4 = pnand %p3075_p1, %p3063_p13  ;;  %s3081_s11 = scalar_lea.vmem %s3080_s7, 8192 }
  0x4e   : > { %p3082_p9 = scmp.lt.s32.totalorder %s293_s17, %s3080_s7  ;;  %p3083_p11 = scmp.lt.s32.totalorder %s3081_s11, %s3074_s13 }
  0x4f   : > { %p3078_p2 = pneg %p3077_p4 }
  0x50   : > { %p3084_p12 = por %p3083_p11, %p3082_p9 }
  0x52   : > { %p3085_p10 = pnand %p3084_p12, %p3078_p2 }
  0x54   : > { %3088 = shalt.err (!%p3085_p10)
}
  0x55   : > { %s3220_s5 = smov 256   ;;  %s3221_s3 = smov 128  }
  0x56   : > { %s3222_s6 = smov 8   ;;  %331 = sbr.rel (%p3357_p0) target bundleno = 1005 (0x3ed), region = 48 }
  0x57   : > { %2737 = dma.hbm_to_vmem [thread:$0]  (!%p3372_p7), %s291_s2, 4096, %s293_s17, %s279_s30, %s3220_s5, %s3221_s3, %s3222_s6  }
  0x58   : > { %s333_s19 = sand.u32 (!%p3357_p0), 1, %s3189_s28   ;;  %p3931_p3 = scmp.ne.s32.totalorder (!%p3357_p0), %s3918_s18, 0 }
  0x59   : > { %s2343_s20 = sshll.u32 (!%p3357_p0), %s333_s19, 8  ;;  %s334_s23 = scalar_lea.sflag (!%p3357_p0), [#allocation4], %s333_s19 }
  0x5a   : > { %s3428_s27 = scalar_lea.vmem (!%p3357_p0), [#allocation3], %s2343_s20 }
  0x5b   : > { %3160 = dma.done.wait (%p3931_p3), %s334_s23, 4096  }
  0x5c   : > { %3162 = vsyncadd (%p3931_p3), %s334_s23, 4294963200  ;;  %p3932_p6 = scmp.ne.s32.totalorder %s3916_s15, 0 }
  0x5e   : > { %3164 = dma.done.wait (%p3932_p6), [#allocation7], 2048  }
  0x5f   : > { %3166 = vsyncadd (%p3932_p6), [#allocation7], 4294965248  ;;  %s3933_s2 = sld [smem:[#allocation14_spill]]  ;;  %s3904_s30 = sand.u32 1, %s3177_s25  }
  0x60   : > { %s2347_s21 = sshll.u32 %s3201_s8, 5  ;;  %s2346_s12 = sshll.u32 %s3904_s30, 8 }
  0x61   : > { %p394_p0 = scmp.lt.s32.totalorder %s2347_s21, 63  ;;  %s3934_s13 = sld [smem:[#allocation20_spill]] }
  0x62   : > { %s3935_s11 = sld [smem:[#allocation22_spill]]  ;;  %s3458_s30 = scalar_lea.vmem [#allocation9], %s2346_s12 }
  0x63   : > { %s3966_s21 = smov (!%p394_p0, %s2347_s21), 63  ;;  %s3936_s20 = sld [smem:[#allocation21_spill]] }
  0x64   : > { %s2348_s18 = sshll.u32 %s3966_s21, 2  ;;  %s2352_s14 = sshll.u32 %s3966_s21, 3 }
  0x65   : > { %s2349_s22 = sshll.u32 %s3933_s2, 5  ;;  %p2353_p5 = scmp.ne.s32.totalorder %s3933_s2, 0 }
  0x66   : > { %p400_p7 = scmp.lt.s32.totalorder %s2349_s22, 63 }
  0x67   : > { %s3446_s4 = scalar_lea.vmem %s3934_s13, %s2348_s18  ;;  %416 = sbr.rel (%p2353_p5) target bundleno = 125 (0x7d), region = 64 }
  0x68   : > { %s3451_s5 = scalar_lea.vmem %s3935_s11, %s2352_s14  ;;  %s3968_s22 = smov (!%p400_p7, %s2349_s22), 63 }
  0x69   : > { %s2350_s3 = sshll.u32 %s3968_s22, 2 }
  0x6a   : > { %s3456_s23 = scalar_lea.vmem %s3936_s20, %s2350_s3 }
  0x6c   : > { %v3223_v0 = vmov 0.0  }
  0x6d   : > { %417 = vst [vmem:[#allocation2 + $0xb0] sm:$0xff] %v3223_v0  ;;  %418 = vst [vmem:[#allocation2] sm:$0xff] %v3223_v0 }
  0x6e   : > { %419 = vst [vmem:[#allocation2 + $0xd8] sm:$0xff] %v3223_v0  ;;  %420 = vst [vmem:[#allocation2 + $0x18] sm:$0xff] %v3223_v0 }
  0x6f   : > { %421 = vst [vmem:[#allocation2 + $0x50] sm:$0xff] %v3223_v0  ;;  %422 = vst [vmem:[#allocation2 + $0x68] sm:$0xff] %v3223_v0 }
  0x70   : > { %423 = vst [vmem:[#allocation2 + $0x30] sm:$0xff] %v3223_v0  ;;  %424 = vst [vmem:[#allocation2 + $0x48] sm:$0xff] %v3223_v0 }
  0x71   : > { %425 = vst [vmem:[#allocation2 + $0x80] sm:$0xff] %v3223_v0  ;;  %426 = vst [vmem:[#allocation2 + $0x88] sm:$0xff] %v3223_v0 }
  0x72   : > { %427 = vst [vmem:[#allocation2 + $0xe8] sm:$0xff] %v3223_v0  ;;  %428 = vst [vmem:[#allocation2 + $0xb8] sm:$0xff] %v3223_v0 }
  0x73   : > { %429 = vst [vmem:[#allocation2 + $0x60] sm:$0xff] %v3223_v0  ;;  %430 = vst [vmem:[#allocation2 + $0xf0] sm:$0xff] %v3223_v0 }
  0x74   : > { %431 = vst [vmem:[#allocation2 + $0x8] sm:$0xff] %v3223_v0  ;;  %432 = vst [vmem:[#allocation2 + $0x78] sm:$0xff] %v3223_v0 }
  0x75   : > { %433 = vst [vmem:[#allocation2 + $0x38] sm:$0xff] %v3223_v0  ;;  %434 = vst [vmem:[#allocation2 + $0x58] sm:$0xff] %v3223_v0 }
  0x76   : > { %435 = vst [vmem:[#allocation2 + $0x40] sm:$0xff] %v3223_v0  ;;  %436 = vst [vmem:[#allocation2 + $0xc8] sm:$0xff] %v3223_v0 }
  0x77   : > { %437 = vst [vmem:[#allocation2 + $0xe0] sm:$0xff] %v3223_v0  ;;  %438 = vst [vmem:[#allocation2 + $0x90] sm:$0xff] %v3223_v0 }
  0x78   : > { %439 = vst [vmem:[#allocation2 + $0x70] sm:$0xff] %v3223_v0  ;;  %440 = vst [vmem:[#allocation2 + $0xc0] sm:$0xff] %v3223_v0 }
  0x79   : > { %441 = vst [vmem:[#allocation2 + $0xa8] sm:$0xff] %v3223_v0  ;;  %442 = vst [vmem:[#allocation2 + $0xd0] sm:$0xff] %v3223_v0 }
  0x7a   : > { %443 = vst [vmem:[#allocation2 + $0x10] sm:$0xff] %v3223_v0  ;;  %444 = vst [vmem:[#allocation2 + $0x28] sm:$0xff] %v3223_v0 }
  0x7b   : > { %445 = vst [vmem:[#allocation2 + $0xa0] sm:$0xff] %v3223_v0  ;;  %446 = vst [vmem:[#allocation2 + $0xf8] sm:$0xff] %v3223_v0 }
  0x7c   : > { %447 = vst [vmem:[#allocation2 + $0x20] sm:$0xff] %v3223_v0  ;;  %448 = vst [vmem:[#allocation2 + $0x98] sm:$0xff] %v3223_v0 }
  0x7d PF: > { %v2847_v1 = vld [vmem:[%s3456_s23 + $0x78] sm:$0xff]   ;;  %v2849_v3 = vld [vmem:[%s3456_s23 + $0x70] sm:$0xff]   ;;  %v2851_v5 = vld [vmem:[%s3456_s23 + $0x68] sm:$0xff]  }
  0x7e   : > { %v2848_v2 = vld [vmem:[%s3456_s23 + $0x38] sm:$0xff]   ;;  %2443 = vmatprep.subr.bf16.mxu0 %v2847_v1  ;;  %2699 = vmatprep.subr.bf16.mxu1 %v2847_v1  ;;  %v2850_v4 = vld [vmem:[%s3456_s23 + $0x30] sm:$0xff]   ;;  %v2852_v6 = vld [vmem:[%s3456_s23 + $0x28] sm:$0xff]  }
  0x7f   : > { %2444 = vmatpush3.bf16.msra.mxu0 %v2848_v2  ;;  %2707 = vmatpush3.bf16.msra.mxu1 %v2848_v2  ;;  %v2853_v7 = vld [vmem:[%s3456_s23 + $0x60] sm:$0xff]   ;;  %v2855_v9 = vld [vmem:[%s3456_s23 + $0x58] sm:$0xff]   ;;  %v2857_v11 = vld [vmem:[%s3456_s23 + $0x50] sm:$0xff]  }
  0x80   : > { %2445 = vmatprep.subr.bf16.mxu0 %v2849_v3  ;;  %2700 = vmatprep.subr.bf16.mxu1 %v2849_v3  ;;  %v2854_v8 = vld [vmem:[%s3456_s23 + $0x20] sm:$0xff]   ;;  %v2856_v10 = vld [vmem:[%s3456_s23 + $0x18] sm:$0xff]   ;;  %v2858_v14 = vld [vmem:[%s3456_s23 + $0x10] sm:$0xff]  }
  0x81   : > { %v2865_v12 = vld [vmem:[%s3428_s27 + $0x4] ss:$8 sps:$4 sm:$0xff]   ;;  %v2863_v19 = vld [vmem:[%s3428_s27] ss:$8 sps:$4 sm:$0xff]   ;;  %v2869_v21 = vld [vmem:[%s3428_s27 + $0x14] ss:$8 sps:$4 sm:$0xff]  }
  0x82   : > { %v2868_v13 = vld [vmem:[%s3428_s27 + $0x84] ss:$8 sps:$4 sm:$0xff]   ;;  %833 = vmatprep.mubr.bf16.mxu0 %v2865_v12  ;;  %v2866_v20 = vld [vmem:[%s3428_s27 + $0x80] ss:$8 sps:$4 sm:$0xff]   ;;  %v2871_v22 = vld [vmem:[%s3428_s27 + $0x94] ss:$8 sps:$4 sm:$0xff]  }
  0x83   : > { %2446 = vmatpush3.bf16.msra.mxu0 %v2850_v4  ;;  %2708 = vmatpush3.bf16.msra.mxu1 %v2850_v4  ;;  %v2859_v15 = vld [vmem:[%s3456_s23 + $0x48] sm:$0xff]   ;;  %v2861_v17 = vld [vmem:[%s3456_s23 + $0x40] sm:$0xff]   ;;  %v2873_v23 = vld [vmem:[%s3428_s27 + $0x10] ss:$8 sps:$4 sm:$0xff]  }
  0x84   : > { %2447 = vmatprep.subr.bf16.mxu0 %v2851_v5  ;;  %2701 = vmatprep.subr.bf16.mxu1 %v2851_v5  ;;  %v2860_v16 = vld [vmem:[%s3456_s23 + $0x8] sm:$0xff]   ;;  %v2862_v18 = vld [vmem:[%s3456_s23] sm:$0xff]   ;;  %v2874_v24 = vld [vmem:[%s3428_s27 + $0x90] ss:$8 sps:$4 sm:$0xff]  }
  0x85   : > { %897 = vmatprep.mubr.bf16.mxu1 %v2868_v13  ;;  %v2875_v25 = vld [vmem:[%s3428_s27 + $0x24] ss:$8 sps:$4 sm:$0xff]   ;;  %v2879_v27 = vld [vmem:[%s3428_s27 + $0x20] ss:$8 sps:$4 sm:$0xff]   ;;  %v2881_v29 = vld [vmem:[%s3428_s27 + $0x34] ss:$8 sps:$4 sm:$0xff]  }
  0x86   : > { %v2877_v26 = vld [vmem:[%s3428_s27 + $0xa4] ss:$8 sps:$4 sm:$0xff]   ;;  %v2880_v28 = vld [vmem:[%s3428_s27 + $0xa0] ss:$8 sps:$4 sm:$0xff]   ;;  %v2883_v30 = vld [vmem:[%s3428_s27 + $0xb4] ss:$8 sps:$4 sm:$0xff]  }
  0x87   : > { %2448 = vmatpush3.bf16.msra.mxu0 %v2852_v6  ;;  %2709 = vmatpush3.bf16.msra.mxu1 %v2852_v6  ;;  %v2885_v31 = vld [vmem:[%s3428_s27 + $0x30] ss:$8 sps:$4 sm:$0xff]   ;;  %v2887_v33 = vld [vmem:[%s3428_s27 + $0x44] ss:$8 sps:$4 sm:$0xff]   ;;  %v2891_v35 = vld [vmem:[%s3428_s27 + $0x40] ss:$8 sps:$4 sm:$0xff]  }
  0x88   : > { %2449 = vmatprep.subr.bf16.mxu0 %v2853_v7  ;;  %2702 = vmatprep.subr.bf16.mxu1 %v2853_v7  ;;  %v2886_v32 = vld [vmem:[%s3428_s27 + $0xb0] ss:$8 sps:$4 sm:$0xff]   ;;  %v2889_v34 = vld [vmem:[%s3428_s27 + $0xc4] ss:$8 sps:$4 sm:$0xff]   ;;  %v2892_v36 = vld [vmem:[%s3428_s27 + $0xc0] ss:$8 sps:$4 sm:$0xff]  }
  0x89   : > { %v2893_v37 = vld [vmem:[%s3428_s27 + $0x54] ss:$8 sps:$4 sm:$0xff]   ;;  %v2897_v39 = vld [vmem:[%s3428_s27 + $0x50] ss:$8 sps:$4 sm:$0xff]   ;;  %v2899_v41 = vld [vmem:[%s3428_s27 + $0x64] ss:$8 sps:$4 sm:$0xff]  }
  0x8a   : > { %v2895_v38 = vld [vmem:[%s3428_s27 + $0xd4] ss:$8 sps:$4 sm:$0xff]   ;;  %v2898_v40 = vld [vmem:[%s3428_s27 + $0xd0] ss:$8 sps:$4 sm:$0xff]   ;;  %v2901_v42 = vld [vmem:[%s3428_s27 + $0xe4] ss:$8 sps:$4 sm:$0xff]  }
  0x8b   : > { %2450 = vmatpush3.bf16.msra.mxu0 %v2854_v8  ;;  %2710 = vmatpush3.bf16.msra.mxu1 %v2854_v8  ;;  %v2903_v43 = vld [vmem:[%s3428_s27 + $0x60] ss:$8 sps:$4 sm:$0xff]   ;;  %v2905_v45 = vld [vmem:[%s3428_s27 + $0x74] ss:$8 sps:$4 sm:$0xff]   ;;  %v2909_v47 = vld [vmem:[%s3428_s27 + $0x70] ss:$8 sps:$4 sm:$0xff]  }
  0x8c   : > { %2451 = vmatprep.subr.bf16.mxu0 %v2855_v9  ;;  %2703 = vmatprep.subr.bf16.mxu1 %v2855_v9  ;;  %v2904_v44 = vld [vmem:[%s3428_s27 + $0xe0] ss:$8 sps:$4 sm:$0xff]   ;;  %v2907_v46 = vld [vmem:[%s3428_s27 + $0xf4] ss:$8 sps:$4 sm:$0xff]   ;;  %v2910_v48 = vld [vmem:[%s3428_s27 + $0xf0] ss:$8 sps:$4 sm:$0xff]  }
  0x8d   : > { %v449_v51 = vld [vmem:[#allocation2 + $0xb0] sm:$0xff]  ;;  %v465_v53 = vld [vmem:[#allocation2 + $0x38] sm:$0xff]  ;;  %v450_v61 = vld [vmem:[#allocation2] sm:$0xff]  ;;  %s3937_s27 = sld [smem:[#allocation14_spill]] }
  0x8e   : > { %v466_v63 = vld [vmem:[#allocation2 + $0x58] sm:$0xff]  ;;  %v467_v9 = vld [vmem:[#allocation2 + $0x40] sm:$0xff] }
  0x8f   : > { %2452 = vmatpush3.bf16.msra.mxu0 %v2856_v10  ;;  %2711 = vmatpush3.bf16.msra.mxu1 %v2856_v10  ;;  %v451_v7 = vld [vmem:[#allocation2 + $0xd8] sm:$0xff] }
  0x90   : > { %2453 = vmatprep.subr.bf16.mxu0 %v2857_v11  ;;  %2704 = vmatprep.subr.bf16.mxu1 %v2857_v11 }
  0x93   : > { %2454 = vmatpush3.bf16.msra.mxu0 %v2858_v14  ;;  %2712 = vmatpush3.bf16.msra.mxu1 %v2858_v14  ;;  %p2402_p8 = scmp.ne.s32.totalorder %s3937_s27, 1 }
  0x94   : > { %2455 = vmatprep.subr.bf16.mxu0 %v2859_v15  ;;  %2705 = vmatprep.subr.bf16.mxu1 %v2859_v15  ;;  %s3938_s12 = sld [smem:[#allocation25_spill]] (!%p2402_p8) }
  0x97   : > { %2456 = vmatpush3.bf16.msra.mxu0 %v2860_v16  ;;  %2713 = vmatpush3.bf16.msra.mxu1 %v2860_v16 }
  0x98   : > { %2457 = vmatprep.subr.bf16.mxu0 %v2861_v17  ;;  %2706 = vmatprep.subr.bf16.mxu1 %v2861_v17  ;;  %v452_v17 = vld [vmem:[#allocation2 + $0x18] sm:$0xff] }
  0x9b   : > { %2458 = vmatpush3.bf16.msra.mxu0 %v2862_v18  ;;  %2714 = vmatpush3.bf16.msra.mxu1 %v2862_v18 }
  0x9e   : > { %834 = vmatmul.mubr.bf16.vlgmr.msra.gmra.mxu0 %v2863_v19  ;;  %898 = vmatmul.mubr.bf16.vlgmr.msra.gmra.mxu1 %v2866_v20  ;;  %v468_v19 = vld [vmem:[#allocation2 + $0xc8] sm:$0xff] }
  0x9f   : > { %841 = vmatprep.mubr.bf16.mxu0 %v2869_v21  ;;  %905 = vmatprep.mubr.bf16.mxu1 %v2871_v22 }
  0xa6   : > { %842 = vmatmul.mubr.bf16.gmra.mxu0 %v2873_v23  ;;  %906 = vmatmul.mubr.bf16.gmra.mxu1 %v2874_v24 }
  0xa7   : > { %849 = vmatprep.mubr.bf16.mxu0 %v2875_v25  ;;  %913 = vmatprep.mubr.bf16.mxu1 %v2877_v26 }
  0xae   : > { %850 = vmatmul.mubr.bf16.gmra.mxu0 %v2879_v27  ;;  %914 = vmatmul.mubr.bf16.gmra.mxu1 %v2880_v28  ;;  %v453_v27 = vld [vmem:[#allocation2 + $0x50] sm:$0xff] }
  0xaf   : > { %857 = vmatprep.mubr.bf16.mxu0 %v2881_v29  ;;  %921 = vmatprep.mubr.bf16.mxu1 %v2883_v30  ;;  %v469_v29 = vld [vmem:[#allocation2 + $0xe0] sm:$0xff] }
  0xb6   : > { %858 = vmatmul.mubr.bf16.gmra.mxu0 %v2885_v31  ;;  %922 = vmatmul.mubr.bf16.gmra.mxu1 %v2886_v32 }
  0xb7   : > { %865 = vmatprep.mubr.bf16.mxu0 %v2887_v33  ;;  %929 = vmatprep.mubr.bf16.mxu1 %v2889_v34 }
  0xbe   : > { %866 = vmatmul.mubr.bf16.gmra.mxu0 %v2891_v35  ;;  %930 = vmatmul.mubr.bf16.gmra.mxu1 %v2892_v36 }
  0xbf   : > { %873 = vmatprep.mubr.bf16.mxu0 %v2893_v37  ;;  %937 = vmatprep.mubr.bf16.mxu1 %v2895_v38  ;;  %v454_v37 = vld [vmem:[#allocation2 + $0x68] sm:$0xff] }
  0xc6   : > { %874 = vmatmul.mubr.bf16.gmra.mxu0 %v2897_v39  ;;  %938 = vmatmul.mubr.bf16.gmra.mxu1 %v2898_v40  ;;  %v470_v39 = vld [vmem:[#allocation2 + $0x90] sm:$0xff] }
  0xc7   : > { %881 = vmatprep.mubr.bf16.mxu0 %v2899_v41  ;;  %945 = vmatprep.mubr.bf16.mxu1 %v2901_v42 }
  0xce   : > { %882 = vmatmul.mubr.bf16.gmra.mxu0 %v2903_v43  ;;  %946 = vmatmul.mubr.bf16.gmra.mxu1 %v2904_v44 }
  0xcf   : > { %889 = vmatprep.mubr.bf16.mxu0 %v2905_v45  ;;  %953 = vmatprep.mubr.bf16.mxu1 %v2907_v46 }
  0xd6   : > { %890 = vmatmul.mubr.bf16.gmra.mxu0 %v2909_v47  ;;  %954 = vmatmul.mubr.bf16.gmra.mxu1 %v2910_v48  ;;  %v455_v47 = vld [vmem:[#allocation2 + $0x30] sm:$0xff] }
 0x15e   : > { %v2459_v49 = vpop.f32.mrf.mxu0  ;;  %v2507_v50 = vpop.f32.mrf.mxu1 }
 0x160   : > { %v2460_v52 = vpop.f32.mrf.mxu0  ;;  %v2508_v54 = vpop.f32.mrf.mxu1 }
 0x161   : > { %v2461_v55 = vadd.f32 %v2460_v52, %v2459_v49  ;;  %v2509_v56 = vadd.f32 %v2508_v54, %v2507_v50  ;;  %v471_v49 = vld [vmem:[#allocation2 + $0x70] sm:$0xff] }
 0x162   : > { %v2462_v57 = vpop.f32.mrf.mxu0  ;;  %v2510_v58 = vpop.f32.mrf.mxu1 }
 0x163   : > { %v962_v59 = vadd.f32 %v2461_v55, %v449_v51  ;;  %v978_v60 = vadd.f32 %v2509_v56, %v465_v53 }
 0x164   : > { %v2463_v62 = vpop.f32.mrf.mxu0  ;;  %v2511_v0 = vpop.f32.mrf.mxu1 }
 0x165   : > { %994 = vst [vmem:[#allocation2 + $0xb0] sm:$0xff] %v962_v59  ;;  %1010 = vst [vmem:[#allocation2 + $0x38] sm:$0xff] %v978_v60  ;;  %v2464_v1 = vadd.f32 %v2463_v62, %v2462_v57  ;;  %v2512_v2 = vadd.f32 %v2511_v0, %v2510_v58  ;;  %v456_v57 = vld [vmem:[#allocation2 + $0x48] sm:$0xff]  ;;  %v472_v59 = vld [vmem:[#allocation2 + $0xc0] sm:$0xff] }
 0x166   : > { %v2465_v3 = vpop.f32.mrf.mxu0  ;;  %v2513_v4 = vpop.f32.mrf.mxu1 }
 0x167   : > { %v963_v5 = vadd.f32 %v2464_v1, %v450_v61  ;;  %v979_v6 = vadd.f32 %v2512_v2, %v466_v63 }
 0x168   : > { %v2466_v8 = vpop.f32.mrf.mxu0  ;;  %v2514_v10 = vpop.f32.mrf.mxu1 }
 0x169   : > { %995 = vst [vmem:[#allocation2] sm:$0xff] %v963_v5  ;;  %1011 = vst [vmem:[#allocation2 + $0x58] sm:$0xff] %v979_v6  ;;  %v2467_v11 = vadd.f32 %v2466_v8, %v2465_v3  ;;  %v2515_v12 = vadd.f32 %v2514_v10, %v2513_v4  ;;  %v457_v3 = vld [vmem:[#allocation2 + $0x80] sm:$0xff]  ;;  %v473_v5 = vld [vmem:[#allocation2 + $0xa8] sm:$0xff] }
 0x16a   : > { %v2468_v13 = vpop.f32.mrf.mxu0  ;;  %v2516_v14 = vpop.f32.mrf.mxu1 }
 0x16b   : > { %v964_v15 = vadd.f32 %v2467_v11, %v451_v7  ;;  %v980_v16 = vadd.f32 %v2515_v12, %v467_v9 }
 0x16c   : > { %v2469_v18 = vpop.f32.mrf.mxu0  ;;  %v2517_v20 = vpop.f32.mrf.mxu1 }
 0x16d   : > { %996 = vst [vmem:[#allocation2 + $0xd8] sm:$0xff] %v964_v15  ;;  %1012 = vst [vmem:[#allocation2 + $0x40] sm:$0xff] %v980_v16  ;;  %v2470_v21 = vadd.f32 %v2469_v18, %v2468_v13  ;;  %v2518_v22 = vadd.f32 %v2517_v20, %v2516_v14  ;;  %v458_v13 = vld [vmem:[#allocation2 + $0x88] sm:$0xff]  ;;  %v474_v15 = vld [vmem:[#allocation2 + $0xd0] sm:$0xff] }
 0x16e   : > { %v2471_v23 = vpop.f32.mrf.mxu0  ;;  %v2519_v24 = vpop.f32.mrf.mxu1 }
 0x16f   : > { %v965_v25 = vadd.f32 %v2470_v21, %v452_v17  ;;  %v981_v26 = vadd.f32 %v2518_v22, %v468_v19 }
 0x170   : > { %v2472_v28 = vpop.f32.mrf.mxu0  ;;  %v2520_v30 = vpop.f32.mrf.mxu1 }
 0x171   : > { %997 = vst [vmem:[#allocation2 + $0x18] sm:$0xff] %v965_v25  ;;  %1013 = vst [vmem:[#allocation2 + $0xc8] sm:$0xff] %v981_v26  ;;  %v2473_v31 = vadd.f32 %v2472_v28, %v2471_v23  ;;  %v2521_v32 = vadd.f32 %v2520_v30, %v2519_v24  ;;  %v459_v23 = vld [vmem:[#allocation2 + $0xe8] sm:$0xff]  ;;  %v475_v25 = vld [vmem:[#allocation2 + $0x10] sm:$0xff] }
 0x172   : > { %v2474_v33 = vpop.f32.mrf.mxu0  ;;  %v2522_v34 = vpop.f32.mrf.mxu1 }
 0x173   : > { %v966_v35 = vadd.f32 %v2473_v31, %v453_v27  ;;  %v982_v36 = vadd.f32 %v2521_v32, %v469_v29 }
 0x174   : > { %v2475_v38 = vpop.f32.mrf.mxu0  ;;  %v2523_v40 = vpop.f32.mrf.mxu1 }
 0x175   : > { %998 = vst [vmem:[#allocation2 + $0x50] sm:$0xff] %v966_v35  ;;  %1014 = vst [vmem:[#allocation2 + $0xe0] sm:$0xff] %v982_v36  ;;  %v2476_v41 = vadd.f32 %v2475_v38, %v2474_v33  ;;  %v2524_v42 = vadd.f32 %v2523_v40, %v2522_v34  ;;  %v460_v33 = vld [vmem:[#allocation2 + $0xb8] sm:$0xff]  ;;  %v476_v35 = vld [vmem:[#allocation2 + $0x28] sm:$0xff] }
 0x176   : > { %v2477_v43 = vpop.f32.mrf.mxu0  ;;  %v2525_v44 = vpop.f32.mrf.mxu1 }
 0x177   : > { %v967_v45 = vadd.f32 %v2476_v41, %v454_v37  ;;  %v983_v46 = vadd.f32 %v2524_v42, %v470_v39 }
 0x178   : > { %v2478_v48 = vpop.f32.mrf.mxu0  ;;  %v2526_v50 = vpop.f32.mrf.mxu1 }
 0x179   : > { %999 = vst [vmem:[#allocation2 + $0x68] sm:$0xff] %v967_v45  ;;  %1015 = vst [vmem:[#allocation2 + $0x90] sm:$0xff] %v983_v46  ;;  %v2479_v51 = vadd.f32 %v2478_v48, %v2477_v43  ;;  %v2527_v52 = vadd.f32 %v2526_v50, %v2525_v44  ;;  %v461_v43 = vld [vmem:[#allocation2 + $0x60] sm:$0xff] }
 0x17a   : > { %v2480_v53 = vpop.f32.mrf.mxu0  ;;  %v2528_v54 = vpop.f32.mrf.mxu1  ;;  %v477_v45 = vld [vmem:[#allocation2 + $0xa0] sm:$0xff] }
 0x17b   : > { %v968_v55 = vadd.f32 %v2479_v51, %v455_v47  ;;  %v984_v56 = vadd.f32 %v2527_v52, %v471_v49 }
 0x17c   : > { %v2481_v58 = vpop.f32.mrf.mxu0  ;;  %v2529_v60 = vpop.f32.mrf.mxu1 }
 0x17d   : > { %1000 = vst [vmem:[#allocation2 + $0x30] sm:$0xff] %v968_v55  ;;  %1016 = vst [vmem:[#allocation2 + $0x70] sm:$0xff] %v984_v56  ;;  %v2482_v61 = vadd.f32 %v2481_v58, %v2480_v53  ;;  %v2530_v62 = vadd.f32 %v2529_v60, %v2528_v54  ;;  %v462_v53 = vld [vmem:[#allocation2 + $0xf0] sm:$0xff]  ;;  %v478_v55 = vld [vmem:[#allocation2 + $0xf8] sm:$0xff] }
 0x17e   : > { %v2483_v63 = vpop.f32.mrf.mxu0  ;;  %v2531_v0 = vpop.f32.mrf.mxu1 }
 0x17f   : > { %v969_v1 = vadd.f32 %v2482_v61, %v456_v57  ;;  %v985_v2 = vadd.f32 %v2530_v62, %v472_v59 }
 0x180   : > { %v2484_v4 = vpop.f32.mrf.mxu0  ;;  %v2532_v6 = vpop.f32.mrf.mxu1 }
 0x181   : > { %1001 = vst [vmem:[#allocation2 + $0x48] sm:$0xff] %v969_v1  ;;  %1017 = vst [vmem:[#allocation2 + $0xc0] sm:$0xff] %v985_v2  ;;  %v2485_v7 = vadd.f32 %v2484_v4, %v2483_v63  ;;  %v2533_v8 = vadd.f32 %v2532_v6, %v2531_v0  ;;  %v463_v63 = vld [vmem:[#allocation2 + $0x8] sm:$0xff]  ;;  %v479_v1 = vld [vmem:[#allocation2 + $0x20] sm:$0xff] }
 0x182   : > { %v2486_v9 = vpop.f32.mrf.mxu0  ;;  %v2534_v10 = vpop.f32.mrf.mxu1 }
 0x183   : > { %v970_v11 = vadd.f32 %v2485_v7, %v457_v3  ;;  %v986_v12 = vadd.f32 %v2533_v8, %v473_v5 }
 0x184   : > { %v2487_v14 = vpop.f32.mrf.mxu0  ;;  %v2535_v16 = vpop.f32.mrf.mxu1 }
 0x185   : > { %1002 = vst [vmem:[#allocation2 + $0x80] sm:$0xff] %v970_v11  ;;  %1018 = vst [vmem:[#allocation2 + $0xa8] sm:$0xff] %v986_v12  ;;  %v2488_v17 = vadd.f32 %v2487_v14, %v2486_v9  ;;  %v2536_v18 = vadd.f32 %v2535_v16, %v2534_v10  ;;  %v464_v9 = vld [vmem:[#allocation2 + $0x78] sm:$0xff] }
 0x186   : > { %v2489_v19 = vpop.f32.mrf.mxu0  ;;  %v2537_v20 = vpop.f32.mrf.mxu1  ;;  %v480_v11 = vld [vmem:[#allocation2 + $0x98] sm:$0xff] }
 0x187   : > { %v971_v21 = vadd.f32 %v2488_v17, %v458_v13  ;;  %v987_v22 = vadd.f32 %v2536_v18, %v474_v15 }
 0x188   : > { %v2490_v24 = vpop.f32.mrf.mxu0  ;;  %v2538_v26 = vpop.f32.mrf.mxu1 }
 0x189   : > { %1003 = vst [vmem:[#allocation2 + $0x88] sm:$0xff] %v971_v21  ;;  %1019 = vst [vmem:[#allocation2 + $0xd0] sm:$0xff] %v987_v22  ;;  %v2491_v27 = vadd.f32 %v2490_v24, %v2489_v19  ;;  %v2539_v28 = vadd.f32 %v2538_v26, %v2537_v20 }
 0x18a   : > { %v2492_v29 = vpop.f32.mrf.mxu0  ;;  %v2540_v30 = vpop.f32.mrf.mxu1 }
 0x18b   : > { %v972_v31 = vadd.f32 %v2491_v27, %v459_v23  ;;  %v988_v32 = vadd.f32 %v2539_v28, %v475_v25 }
 0x18c   : > { %v2493_v34 = vpop.f32.mrf.mxu0  ;;  %v2541_v36 = vpop.f32.mrf.mxu1 }
 0x18d   : > { %1004 = vst [vmem:[#allocation2 + $0xe8] sm:$0xff] %v972_v31  ;;  %1020 = vst [vmem:[#allocation2 + $0x10] sm:$0xff] %v988_v32  ;;  %v2494_v37 = vadd.f32 %v2493_v34, %v2492_v29  ;;  %v2542_v38 = vadd.f32 %v2541_v36, %v2540_v30 }
 0x18e   : > { %v2495_v39 = vpop.f32.mrf.mxu0  ;;  %v2543_v40 = vpop.f32.mrf.mxu1 }
 0x18f   : > { %v973_v41 = vadd.f32 %v2494_v37, %v460_v33  ;;  %v989_v42 = vadd.f32 %v2542_v38, %v476_v35 }
 0x190   : > { %v2496_v44 = vpop.f32.mrf.mxu0  ;;  %v2544_v46 = vpop.f32.mrf.mxu1 }
 0x191   : > { %1005 = vst [vmem:[#allocation2 + $0xb8] sm:$0xff] %v973_v41  ;;  %1021 = vst [vmem:[#allocation2 + $0x28] sm:$0xff] %v989_v42  ;;  %v2497_v47 = vadd.f32 %v2496_v44, %v2495_v39  ;;  %v2545_v48 = vadd.f32 %v2544_v46, %v2543_v40 }
 0x192   : > { %v2498_v49 = vpop.f32.mrf.mxu0  ;;  %v2546_v50 = vpop.f32.mrf.mxu1 }
 0x193   : > { %v974_v51 = vadd.f32 %v2497_v47, %v461_v43  ;;  %v990_v52 = vadd.f32 %v2545_v48, %v477_v45 }
 0x194   : > { %v2499_v54 = vpop.f32.mrf.mxu0  ;;  %v2547_v56 = vpop.f32.mrf.mxu1 }
 0x195   : > { %1006 = vst [vmem:[#allocation2 + $0x60] sm:$0xff] %v974_v51  ;;  %1022 = vst [vmem:[#allocation2 + $0xa0] sm:$0xff] %v990_v52  ;;  %v2500_v57 = vadd.f32 %v2499_v54, %v2498_v49  ;;  %v2548_v58 = vadd.f32 %v2547_v56, %v2546_v50 }
 0x196   : > { %v2501_v59 = vpop.f32.mrf.mxu0  ;;  %v2549_v60 = vpop.f32.mrf.mxu1 }
 0x197   : > { %v975_v61 = vadd.f32 %v2500_v57, %v462_v53  ;;  %v991_v62 = vadd.f32 %v2548_v58, %v478_v55 }
 0x198   : > { %v2502_v0 = vpop.f32.mrf.mxu0  ;;  %v2550_v2 = vpop.f32.mrf.mxu1 }
 0x199   : > { %1007 = vst [vmem:[#allocation2 + $0xf0] sm:$0xff] %v975_v61  ;;  %1023 = vst [vmem:[#allocation2 + $0xf8] sm:$0xff] %v991_v62  ;;  %v2503_v3 = vadd.f32 %v2502_v0, %v2501_v59  ;;  %v2551_v4 = vadd.f32 %v2550_v2, %v2549_v60 }
 0x19a   : > { %v2504_v5 = vpop.f32.mrf.mxu0  ;;  %v2552_v6 = vpop.f32.mrf.mxu1 }
 0x19b   : > { %v976_v7 = vadd.f32 %v2503_v3, %v463_v63  ;;  %v992_v8 = vadd.f32 %v2551_v4, %v479_v1 }
 0x19c   : > { %v2505_v10 = vpop.f32.mrf.mxu0  ;;  %v2553_v12 = vpop.f32.mrf.mxu1 }
 0x19d   : > { %1008 = vst [vmem:[#allocation2 + $0x8] sm:$0xff] %v976_v7  ;;  %1024 = vst [vmem:[#allocation2 + $0x20] sm:$0xff] %v992_v8  ;;  %v2506_v13 = vadd.f32 %v2505_v10, %v2504_v5  ;;  %v2554_v14 = vadd.f32 %v2553_v12, %v2552_v6  ;;  %1029 = sbr.rel (%p2402_p8) target bundleno = 978 (0x3d2), region = 68 }
 0x19f   : > { %v977_v15 = vadd.f32 %v2506_v13, %v464_v9  ;;  %v993_v16 = vadd.f32 %v2554_v14, %v480_v11 }
 0x1a1   : > { %1009 = vst [vmem:[#allocation2 + $0x78] sm:$0xff] %v977_v15  ;;  %1025 = vst [vmem:[#allocation2 + $0x98] sm:$0xff] %v993_v16 }
 0x1a2   : > { %v1064_v17 = vld [vmem:[%s3451_s5 + $0x10] sm:$0xff]  ;;  %v1062_v18 = vld [vmem:[%s3451_s5] sm:$0xff]  ;;  %v3224_v19 = vmov 0   ;;  %v1065_v20 = vld [vmem:[%s3451_s5 + $0x18] sm:$0xff] }
 0x1a3   : > { %2912 = vset.pattern.permute.xlu1 %v3224_v19  ;;  %2911 = vset.pattern.permute.xlu0 %v3224_v19  ;;  %v1063_v21 = vld [vmem:[%s3451_s5 + $0x8] sm:$0xff]  ;;  %v1066_v23 = vld [vmem:[%s3451_s5 + $0x20] sm:$0xff]  ;;  %v1069_v24 = vld [vmem:[%s3451_s5 + $0x38] sm:$0xff] }
 0x1a4   : > { %1106 = vperm.xlu1 %2912, %v1064_v17   ;;  %1096 = vperm.xlu0 %2911, %v1062_v18   ;;  %v1067_v22 = vld [vmem:[%s3451_s5 + $0x28] sm:$0xff]  ;;  %v1068_v25 = vld [vmem:[%s3451_s5 + $0x30] sm:$0xff]  ;;  %v2913_v26 = vld [vmem:[#allocation6 + $0x38] sm:$0xff]  }
 0x1a5   : > { %v2914_v27 = vld [vmem:[#allocation6 + $0x30] sm:$0xff]   ;;  %v1071_v28 = vld [vmem:[%s3451_s5 + $0x48] sm:$0xff]  ;;  %2651 = vmatprep.subr.bf16.mxu1 %v2913_v26  ;;  %v2915_v29 = vld [vmem:[#allocation8 + $0x38] sm:$0xff]  }
 0x1a6   : > { %v1070_v30 = vld [vmem:[%s3451_s5 + $0x40] sm:$0xff]  ;;  %2652 = vmatpush3.bf16.msra.mxu1 %v2913_v26  ;;  %2603 = vmatprep.subr.bf16.mxu0 %v2915_v29  ;;  %v2917_v31 = vld [vmem:[#allocation8 + $0x30] sm:$0xff]   ;;  %v2916_v32 = vld [vmem:[#allocation6 + $0x28] sm:$0xff]  }
 0x1a7   : > { %2653 = vmatprep.subr.bf16.mxu1 %v2914_v27  ;;  %2604 = vmatpush3.bf16.msra.mxu0 %v2915_v29  ;;  %v2919_v33 = vld [vmem:[#allocation8 + $0x28] sm:$0xff]   ;;  %v1073_v34 = vld [vmem:[%s3451_s5 + $0x58] sm:$0xff]  ;;  %v1072_v35 = vld [vmem:[%s3451_s5 + $0x50] sm:$0xff] }
 0x1a8   : > { %1111 = vperm.xlu1 %2912, %v1065_v20   ;;  %1101 = vperm.xlu0 %2911, %v1063_v21   ;;  %v2918_v36 = vld [vmem:[#allocation6 + $0x20] sm:$0xff]   ;;  %v1075_v38 = vld [vmem:[%s3451_s5 + $0x68] sm:$0xff]  ;;  %v2920_v40 = vld [vmem:[#allocation6 + $0x18] sm:$0xff]  }
 0x1a9   : > { %2605 = vmatprep.subr.bf16.mxu0 %v2917_v31  ;;  %v2921_v37 = vld [vmem:[#allocation8 + $0x20] sm:$0xff]   ;;  %v1077_v41 = vld [vmem:[%s3451_s5 + $0x78] sm:$0xff]  ;;  %v1076_v43 = vld [vmem:[%s3451_s5 + $0x70] sm:$0xff] }
 0x1aa   : > { %2654 = vmatpush3.bf16.msra.mxu1 %v2914_v27  ;;  %v1074_v39 = vld [vmem:[%s3451_s5 + $0x60] sm:$0xff]  ;;  %v2923_v42 = vld [vmem:[#allocation8 + $0x18] sm:$0xff]   ;;  %v2922_v45 = vld [vmem:[#allocation6 + $0x10] sm:$0xff]  }
 0x1ab   : > { %2655 = vmatprep.subr.bf16.mxu1 %v2916_v32  ;;  %2606 = vmatpush3.bf16.msra.mxu0 %v2917_v31  ;;  %v2928_v44 = vld [vmem:[%s3446_s4] sm:$0xff]   ;;  %v2925_v46 = vld [vmem:[#allocation8 + $0x10] sm:$0xff]   ;;  %v1079_v47 = vld [vmem:[%s3451_s5 + $0x88] sm:$0xff] }
 0x1ac   : > { %1121 = vperm.xlu1 %2912, %v1067_v22   ;;  %1116 = vperm.xlu0 %2911, %v1066_v23   ;;  %v1078_v48 = vld [vmem:[%s3451_s5 + $0x80] sm:$0xff]  ;;  %v2924_v49 = vld [vmem:[#allocation6 + $0x8] sm:$0xff]   ;;  %v1081_v51 = vld [vmem:[%s3451_s5 + $0x98] sm:$0xff] }
 0x1ad   : > { %2607 = vmatprep.subr.bf16.mxu0 %v2919_v33  ;;  %2667 = vmatprep.mubr.bf16.mxu1 %v2928_v44  ;;  %v2927_v50 = vld [vmem:[#allocation8 + $0x8] sm:$0xff]   ;;  %v1080_v52 = vld [vmem:[%s3451_s5 + $0x90] sm:$0xff]  ;;  %v2926_v53 = vld [vmem:[#allocation6] sm:$0xff]  }
 0x1ae   : > { %2656 = vmatpush3.bf16.msra.mxu1 %v2916_v32  ;;  %v2930_v54 = vld [vmem:[#allocation8] sm:$0xff]   ;;  %v1083_v55 = vld [vmem:[%s3451_s5 + $0xa8] sm:$0xff]  ;;  %v1085_v57 = vld [vmem:[%s3451_s5 + $0xb8] sm:$0xff] }
 0x1af   : > { %2657 = vmatprep.subr.bf16.mxu1 %v2918_v36  ;;  %2608 = vmatpush3.bf16.msra.mxu0 %v2919_v33  ;;  %v1082_v56 = vld [vmem:[%s3451_s5 + $0xa0] sm:$0xff]  ;;  %v1084_v58 = vld [vmem:[%s3451_s5 + $0xb0] sm:$0xff]  ;;  %v2929_v59 = vld [vmem:[%s3446_s4 + $0x8] sm:$0xff]  }
 0x1b0   : > { %1131 = vperm.xlu1 %2912, %v1069_v24   ;;  %1126 = vperm.xlu0 %2911, %v1068_v25   ;;  %v2931_v60 = vld [vmem:[%s3446_s4 + $0x10] sm:$0xff]   ;;  %v1087_v61 = vld [vmem:[%s3451_s5 + $0xc8] sm:$0xff]  ;;  %v1086_v62 = vld [vmem:[%s3451_s5 + $0xc0] sm:$0xff] }
 0x1b1   : > { %2609 = vmatprep.subr.bf16.mxu0 %v2921_v37  ;;  %v1089_v63 = vld [vmem:[%s3451_s5 + $0xd8] sm:$0xff]  ;;  %v1088_v0 = vld [vmem:[%s3451_s5 + $0xd0] sm:$0xff]  ;;  %v2933_v2 = vld [vmem:[%s3446_s4 + $0x20] sm:$0xff]  }
 0x1b2   : > { %2658 = vmatpush3.bf16.msra.mxu1 %v2918_v36  ;;  %v2932_v1 = vld [vmem:[%s3446_s4 + $0x18] sm:$0xff]   ;;  %v1091_v3 = vld [vmem:[%s3451_s5 + $0xe8] sm:$0xff]  ;;  %v1090_v4 = vld [vmem:[%s3451_s5 + $0xe0] sm:$0xff] }
 0x1b3   : > { %2659 = vmatprep.subr.bf16.mxu1 %v2920_v40  ;;  %2610 = vmatpush3.bf16.msra.mxu0 %v2921_v37  ;;  %v1093_v5 = vld [vmem:[%s3451_s5 + $0xf8] sm:$0xff]  ;;  %v1092_v6 = vld [vmem:[%s3451_s5 + $0xf0] sm:$0xff]  ;;  %v2934_v7 = vld [vmem:[%s3446_s4 + $0x28] sm:$0xff]  }
 0x1b4   : > { %1141 = vperm.xlu1 %2912, %v1071_v28   ;;  %1136 = vperm.xlu0 %2911, %v1070_v30   ;;  %v2935_v8 = vld [vmem:[%s3446_s4 + $0x30] sm:$0xff]   ;;  %v2936_v9 = vld [vmem:[%s3446_s4 + $0x38] sm:$0xff]   ;;  %v2937_v10 = vld [vmem:[%s3446_s4 + $0x40] sm:$0xff]  }
 0x1b5   : > { %2611 = vmatprep.subr.bf16.mxu0 %v2923_v42  ;;  %v2938_v11 = vld [vmem:[%s3446_s4 + $0x48] sm:$0xff]   ;;  %v2939_v12 = vld [vmem:[%s3446_s4 + $0x50] sm:$0xff]   ;;  %v2940_v13 = vld [vmem:[%s3446_s4 + $0x58] sm:$0xff]  }
 0x1b6   : > { %2660 = vmatpush3.bf16.msra.mxu1 %v2920_v40  ;;  %v2941_v14 = vld [vmem:[%s3446_s4 + $0x60] sm:$0xff]   ;;  %v2942_v15 = vld [vmem:[%s3446_s4 + $0x68] sm:$0xff]   ;;  %v2943_v16 = vld [vmem:[%s3446_s4 + $0x70] sm:$0xff]  }
 0x1b7   : > { %2661 = vmatprep.subr.bf16.mxu1 %v2922_v45  ;;  %2612 = vmatpush3.bf16.msra.mxu0 %v2923_v42  ;;  %v2944_v17 = vld [vmem:[%s3446_s4 + $0x78] sm:$0xff]   ;;  %v1030_v21 = vld [vmem:[#allocation2 + $0xb0] sm:$0xff]  ;;  %v1031_v23 = vld [vmem:[#allocation2] sm:$0xff] }
 0x1b8   : > { %1151 = vperm.xlu1 %2912, %v1073_v34   ;;  %1146 = vperm.xlu0 %2911, %v1072_v35   ;;  %v1032_v20 = vld [vmem:[#allocation2 + $0xd8] sm:$0xff]  ;;  %v1035_v30 = vld [vmem:[#allocation2 + $0x68] sm:$0xff]  ;;  %v1034_v31 = vld [vmem:[#allocation2 + $0x50] sm:$0xff] }
 0x1b9   : > { %2613 = vmatprep.subr.bf16.mxu0 %v2925_v46  ;;  %v1033_v22 = vld [vmem:[#allocation2 + $0x18] sm:$0xff] }
 0x1ba   : > { %2662 = vmatpush3.bf16.msra.mxu1 %v2922_v45  ;;  %v1039_v45 = vld [vmem:[#allocation2 + $0x88] sm:$0xff] }
 0x1bb   : > { %2663 = vmatprep.subr.bf16.mxu1 %v2924_v49  ;;  %2614 = vmatpush3.bf16.msra.mxu0 %v2925_v46  ;;  %v1038_v46 = vld [vmem:[#allocation2 + $0x80] sm:$0xff] }
 0x1bc   : > { %1161 = vperm.xlu1 %2912, %v1075_v38   ;;  %1156 = vperm.xlu0 %2911, %v1074_v39   ;;  %v1037_v38 = vld [vmem:[#allocation2 + $0x48] sm:$0xff]  ;;  %v1036_v39 = vld [vmem:[#allocation2 + $0x30] sm:$0xff] }
 0x1bd   : > { %2615 = vmatprep.subr.bf16.mxu0 %v2927_v50 }
 0x1be   : > { %2664 = vmatpush3.bf16.msra.mxu1 %v2924_v49 }
 0x1bf   : > { %2665 = vmatprep.subr.bf16.mxu1 %v2926_v53  ;;  %2616 = vmatpush3.bf16.msra.mxu0 %v2927_v50 }
 0x1c0   : > { %1171 = vperm.xlu1 %2912, %v1077_v41   ;;  %1166 = vperm.xlu0 %2911, %v1076_v43  }
 0x1c1   : > { %2617 = vmatprep.subr.bf16.mxu0 %v2930_v54 }
 0x1c2   : > { %2666 = vmatpush3.bf16.msra.mxu1 %v2926_v53  ;;  %v1040_v53 = vld [vmem:[#allocation2 + $0xe8] sm:$0xff] }
 0x1c3   : > { %2618 = vmatpush3.bf16.msra.mxu0 %v2930_v54 }
 0x1c4   : > { %1181 = vperm.xlu1 %2912, %v1079_v47   ;;  %1176 = vperm.xlu0 %2911, %v1078_v48  }
 0x1c5   : > { %2668 = vmatmul.mubr.bf16.vlgmr.msra.gmra.mxu1 %v2929_v59  ;;  %v1043_v59 = vld [vmem:[#allocation2 + $0xf0] sm:$0xff] }
 0x1c6   : > { %2671 = vmatprep.mubr.bf16.mxu1 %v2931_v60  ;;  %v1042_v60 = vld [vmem:[#allocation2 + $0x60] sm:$0xff] }
 0x1c8   : > { %1191 = vperm.xlu1 %2912, %v1081_v51   ;;  %1186 = vperm.xlu0 %2911, %v1080_v52   ;;  %v1041_v52 = vld [vmem:[#allocation2 + $0xb8] sm:$0xff] }
 0x1cc   : > { %1201 = vperm.xlu1 %2912, %v1083_v55   ;;  %1196 = vperm.xlu0 %2911, %v1082_v56  }
 0x1cd   : > { %2672 = vmatmul.mubr.bf16.gmra.mxu1 %v2932_v1 }
 0x1ce   : > { %2675 = vmatprep.mubr.bf16.mxu1 %v2933_v2  ;;  %v1045_v2 = vld [vmem:[#allocation2 + $0x78] sm:$0xff] }
 0x1d0   : > { %1211 = vperm.xlu1 %2912, %v1085_v57   ;;  %1206 = vperm.xlu0 %2911, %v1084_v58  }
 0x1d4   : > { %1221 = vperm.xlu1 %2912, %v1087_v61   ;;  %1216 = vperm.xlu0 %2911, %v1086_v62  }
 0x1d5   : > { %2676 = vmatmul.mubr.bf16.gmra.mxu1 %v2934_v7 }
 0x1d6   : > { %2679 = vmatprep.mubr.bf16.mxu1 %v2935_v8 }
 0x1d8   : > { %1231 = vperm.xlu1 %2912, %v1089_v63   ;;  %1226 = vperm.xlu0 %2911, %v1088_v0  }
 0x1dc   : > { %1241 = vperm.xlu1 %2912, %v1091_v3   ;;  %1236 = vperm.xlu0 %2911, %v1090_v4   ;;  %v1044_v3 = vld [vmem:[#allocation2 + $0x8] sm:$0xff] }
 0x1dd   : > { %2680 = vmatmul.mubr.bf16.gmra.mxu1 %v2936_v9  ;;  %v1047_v9 = vld [vmem:[#allocation2 + $0x58] sm:$0xff] }
 0x1de   : > { %2683 = vmatprep.mubr.bf16.mxu1 %v2937_v10  ;;  %v1046_v10 = vld [vmem:[#allocation2 + $0x38] sm:$0xff] }
 0x1e0   : > { %1251 = vperm.xlu1 %2912, %v1093_v5   ;;  %1246 = vperm.xlu0 %2911, %v1092_v6  }
 0x1e5   : > { %2684 = vmatmul.mubr.bf16.gmra.mxu1 %v2938_v11 }
 0x1e6   : > { %2687 = vmatprep.mubr.bf16.mxu1 %v2939_v12 }
 0x1ed   : > { %2688 = vmatmul.mubr.bf16.gmra.mxu1 %v2940_v13 }
 0x1ee   : > { %2691 = vmatprep.mubr.bf16.mxu1 %v2941_v14 }
 0x1f5   : > { %2692 = vmatmul.mubr.bf16.gmra.mxu1 %v2942_v15 }
 0x1f6   : > { %2695 = vmatprep.mubr.bf16.mxu1 %v2943_v16  ;;  %v1049_v16 = vld [vmem:[#allocation2 + $0xc8] sm:$0xff] }
 0x1fd   : > { %2696 = vmatmul.mubr.bf16.gmra.mxu1 %v2944_v17  ;;  %v1048_v17 = vld [vmem:[#allocation2 + $0x40] sm:$0xff] }
 0x21f   : > { %v1107_v18 = vpop.permute.xlu1 %1106  ;;  %v1097_v19 = vpop.permute.xlu0 %1096 }
 0x220   : > { %v1256_v26 = vmul.f32 %v1107_v18, %v1032_v20  ;;  %v1254_v27 = vmul.f32 %v1097_v19, %v1030_v21 }
 0x223   : > { %v1112_v24 = vpop.permute.xlu1 %1111  ;;  %v1102_v25 = vpop.permute.xlu0 %1101 }
 0x224   : > { %v1257_v28 = vmul.f32 %v1112_v24, %v1033_v22  ;;  %v1255_v29 = vmul.f32 %v1102_v25, %v1031_v23  ;;  %v1051_v23 = vld [vmem:[#allocation2 + $0x90] sm:$0xff]  ;;  %v1050_v24 = vld [vmem:[#allocation2 + $0xe0] sm:$0xff] }
 0x226   : > { %v1335_v32 = vpack.c.bf16 %v1257_v28, %v1256_v26  ;;  %v1334_v33 = vpack.c.bf16 %v1255_v29, %v1254_v27 }
 0x227   : > { %v1122_v34 = vpop.permute.xlu1 %1121  ;;  %v1117_v35 = vpop.permute.xlu0 %1116 }
 0x228   : > { %v1259_v36 = vmul.f32 %v1122_v34, %v1035_v30  ;;  %v1258_v37 = vmul.f32 %v1117_v35, %v1034_v31  ;;  %2619 = vmatprep.mubr.bf16.mxu0 %v1334_v33  ;;  %v1053_v30 = vld [vmem:[#allocation2 + $0xc0] sm:$0xff]  ;;  %v1052_v31 = vld [vmem:[#allocation2 + $0x70] sm:$0xff] }
 0x229   : > { %2620 = vmatmul.mubr.bf16.vlgmr.msra.gmra.mxu0 %v1335_v32 }
 0x22a   : > { %v1336_v40 = vpack.c.bf16 %v1259_v36, %v1258_v37  ;;  %v1055_v37 = vld [vmem:[#allocation2 + $0xd0] sm:$0xff] }
 0x22b   : > { %v1132_v41 = vpop.permute.xlu1 %1131  ;;  %v1127_v42 = vpop.permute.xlu0 %1126 }
 0x22c   : > { %v1261_v43 = vmul.f32 %v1132_v41, %v1037_v38  ;;  %v1260_v44 = vmul.f32 %v1127_v42, %v1036_v39  ;;  %2623 = vmatprep.mubr.bf16.mxu0 %v1336_v40  ;;  %v1054_v38 = vld [vmem:[#allocation2 + $0xa8] sm:$0xff] }
 0x22e   : > { %v1337_v47 = vpack.c.bf16 %v1261_v43, %v1260_v44  ;;  %v1057_v44 = vld [vmem:[#allocation2 + $0x28] sm:$0xff] }
 0x22f   : > { %v1142_v48 = vpop.permute.xlu1 %1141  ;;  %v1137_v49 = vpop.permute.xlu0 %1136 }
 0x230   : > { %v1263_v50 = vmul.f32 %v1142_v48, %v1039_v45  ;;  %v1262_v51 = vmul.f32 %v1137_v49, %v1038_v46  ;;  %v1056_v45 = vld [vmem:[#allocation2 + $0x10] sm:$0xff] }
 0x231   : > { %2624 = vmatmul.mubr.bf16.gmra.mxu0 %v1337_v47 }
 0x232   : > { %v1338_v54 = vpack.c.bf16 %v1263_v50, %v1262_v51  ;;  %v1059_v51 = vld [vmem:[#allocation2 + $0xf8] sm:$0xff] }
 0x233   : > { %v1152_v55 = vpop.permute.xlu1 %1151  ;;  %v1147_v56 = vpop.permute.xlu0 %1146 }
 0x234   : > { %v1265_v57 = vmul.f32 %v1152_v55, %v1041_v52  ;;  %v1264_v58 = vmul.f32 %v1147_v56, %v1040_v53  ;;  %2627 = vmatprep.mubr.bf16.mxu0 %v1338_v54  ;;  %v1058_v52 = vld [vmem:[#allocation2 + $0xa0] sm:$0xff] }
 0x236   : > { %v1339_v61 = vpack.c.bf16 %v1265_v57, %v1264_v58  ;;  %v1061_v58 = vld [vmem:[#allocation2 + $0x98] sm:$0xff] }
 0x237   : > { %v1162_v62 = vpop.permute.xlu1 %1161  ;;  %v1157_v63 = vpop.permute.xlu0 %1156 }
 0x238   : > { %v1267_v0 = vmul.f32 %v1162_v62, %v1043_v59  ;;  %v1266_v1 = vmul.f32 %v1157_v63, %v1042_v60  ;;  %v1060_v59 = vld [vmem:[#allocation2 + $0x20] sm:$0xff] }
 0x239   : > { %2628 = vmatmul.mubr.bf16.gmra.mxu0 %v1339_v61 }
 0x23a   : > { %v1340_v4 = vpack.c.bf16 %v1267_v0, %v1266_v1 }
 0x23b   : > { %v1172_v5 = vpop.permute.xlu1 %1171  ;;  %v1167_v6 = vpop.permute.xlu0 %1166 }
 0x23c   : > { %v1269_v7 = vmul.f32 %v1172_v5, %v1045_v2  ;;  %v1268_v8 = vmul.f32 %v1167_v6, %v1044_v3  ;;  %2631 = vmatprep.mubr.bf16.mxu0 %v1340_v4 }
 0x23e   : > { %v1341_v11 = vpack.c.bf16 %v1269_v7, %v1268_v8 }
 0x23f   : > { %v1182_v12 = vpop.permute.xlu1 %1181  ;;  %v1177_v13 = vpop.permute.xlu0 %1176 }
 0x240   : > { %v1271_v14 = vmul.f32 %v1182_v12, %v1047_v9  ;;  %v1270_v15 = vmul.f32 %v1177_v13, %v1046_v10 }
 0x241   : > { %2632 = vmatmul.mubr.bf16.gmra.mxu0 %v1341_v11 }
 0x242   : > { %v1342_v18 = vpack.c.bf16 %v1271_v14, %v1270_v15 }
 0x243   : > { %v1192_v19 = vpop.permute.xlu1 %1191  ;;  %v1187_v20 = vpop.permute.xlu0 %1186 }
 0x244   : > { %v1273_v21 = vmul.f32 %v1192_v19, %v1049_v16  ;;  %v1272_v22 = vmul.f32 %v1187_v20, %v1048_v17  ;;  %2635 = vmatprep.mubr.bf16.mxu0 %v1342_v18  ;;  %v3569_v19 = vld [vmem:[%s3938_s12] ss:$0 sm:$0xff] }
 0x246   : > { %v1343_v25 = vpack.c.bf16 %v1273_v21, %v1272_v22 }
 0x247   : > { %v1202_v26 = vpop.permute.xlu1 %1201  ;;  %v1197_v27 = vpop.permute.xlu0 %1196 }
 0x248   : > { %v1275_v28 = vmul.f32 %v1202_v26, %v1051_v23  ;;  %v1274_v29 = vmul.f32 %v1197_v27, %v1050_v24 }
 0x249   : > { %2636 = vmatmul.mubr.bf16.gmra.mxu0 %v1343_v25 }
 0x24a   : > { %v1344_v32 = vpack.c.bf16 %v1275_v28, %v1274_v29 }
 0x24b   : > { %v1212_v33 = vpop.permute.xlu1 %1211  ;;  %v1207_v34 = vpop.permute.xlu0 %1206 }
 0x24c   : > { %v1277_v35 = vmul.f32 %v1212_v33, %v1053_v30  ;;  %v1276_v36 = vmul.f32 %v1207_v34, %v1052_v31  ;;  %2639 = vmatprep.mubr.bf16.mxu0 %v1344_v32 }
 0x24e   : > { %v1345_v39 = vpack.c.bf16 %v1277_v35, %v1276_v36 }
 0x24f   : > { %v1222_v40 = vpop.permute.xlu1 %1221  ;;  %v1217_v41 = vpop.permute.xlu0 %1216 }
 0x250   : > { %v1279_v42 = vmul.f32 %v1222_v40, %v1055_v37  ;;  %v1278_v43 = vmul.f32 %v1217_v41, %v1054_v38 }
 0x251   : > { %2640 = vmatmul.mubr.bf16.gmra.mxu0 %v1345_v39 }
 0x252   : > { %v1346_v46 = vpack.c.bf16 %v1279_v42, %v1278_v43 }
 0x253   : > { %v1232_v47 = vpop.permute.xlu1 %1231  ;;  %v1227_v48 = vpop.permute.xlu0 %1226 }
 0x254   : > { %v1281_v49 = vmul.f32 %v1232_v47, %v1057_v44  ;;  %v1280_v50 = vmul.f32 %v1227_v48, %v1056_v45  ;;  %2643 = vmatprep.mubr.bf16.mxu0 %v1346_v46 }
 0x256   : > { %v1347_v53 = vpack.c.bf16 %v1281_v49, %v1280_v50 }
 0x257   : > { %v1242_v54 = vpop.permute.xlu1 %1241  ;;  %v1237_v55 = vpop.permute.xlu0 %1236 }
 0x258   : > { %v1283_v56 = vmul.f32 %v1242_v54, %v1059_v51  ;;  %v1282_v57 = vmul.f32 %v1237_v55, %v1058_v52 }
 0x259   : > { %2644 = vmatmul.mubr.bf16.gmra.mxu0 %v1347_v53 }
 0x25a   : > { %v1348_v60 = vpack.c.bf16 %v1283_v56, %v1282_v57 }
 0x25b   : > { %v1252_v61 = vpop.permute.xlu1 %1251  ;;  %v1247_v62 = vpop.permute.xlu0 %1246 }
 0x25c   : > { %v1285_v63 = vmul.f32 %v1252_v61, %v1061_v58  ;;  %v1284_v0 = vmul.f32 %v1247_v62, %v1060_v59  ;;  %2647 = vmatprep.mubr.bf16.mxu0 %v1348_v60 }
 0x25e   : > { %v1349_v1 = vpack.c.bf16 %v1285_v63, %v1284_v0 }
 0x261   : > { %2648 = vmatmul.mubr.bf16.gmra.mxu0 %v1349_v1 }
 0x285   : > { %v2669_v2 = vpop.f32.mrf.mxu1 }
 0x287   : > { %v1753_v3 = vpop.f32.mrf.mxu1 }
 0x289   : > { %v2670_v4 = vpop.f32.mrf.mxu1 }
 0x28b   : > { %v1756_v5 = vpop.f32.mrf.mxu1 }
 0x28d   : > { %v2673_v6 = vpop.f32.mrf.mxu1 }
 0x28f   : > { %v1769_v7 = vpop.f32.mrf.mxu1 }
 0x291   : > { %v2674_v8 = vpop.f32.mrf.mxu1 }
 0x293   : > { %v1772_v9 = vpop.f32.mrf.mxu1 }
 0x295   : > { %v2677_v10 = vpop.f32.mrf.mxu1 }
 0x297   : > { %v1785_v11 = vpop.f32.mrf.mxu1 }
 0x299   : > { %v2678_v12 = vpop.f32.mrf.mxu1 }
 0x29b   : > { %v1788_v13 = vpop.f32.mrf.mxu1 }
 0x29d   : > { %v3558_v14 = vpop.f32.mrf.mxu1 }
 0x29f   : > { %v3560_v15 = vpop.f32.mrf.mxu1 }
 0x2a1   : > { %v3562_v16 = vpop.f32.mrf.mxu1 }
 0x2a3   : > { %v3564_v17 = vpop.f32.mrf.mxu1 }
 0x2a5   : > { %v3571_v22 = vpop.f32.mrf.mxu1 }
 0x2a7   : > { %v3581_v30 = vpop.f32.mrf.mxu1 }
 0x2a9   : > { %v3591_v38 = vpop.f32.mrf.mxu1 }
 0x2ab   : > { %v3600_v46 = vpop.f32.mrf.mxu1 }
 0x2ad   : > { %v2689_v56 = vpop.f32.mrf.mxu1 }
 0x2af   : > { %v1833_v0 = vpop.f32.mrf.mxu1 }
 0x2e9   : > { %v2621_v18 = vpop.f32.mrf.mxu0 }
 0x2ea   : > { %v1762_v20 = vadd.f32 %v2669_v2, %v2621_v18 }
 0x2eb   : > { %v1448_v21 = vpop.f32.mrf.mxu0 }
 0x2ec   : > { %v3574_v23 = vadd.f32 %v3569_v19, %v1762_v20  ;;  %v1754_v24 = vadd.f32 %v1753_v3, %v1448_v21 }
 0x2ed   : > { %v2622_v25 = vpop.f32.mrf.mxu0 }
 0x2ee   : > { %v3577_v26 = vadd.f32 %v3569_v19, %v1754_v24  ;;  %v1765_v27 = vadd.f32 %v2670_v4, %v2622_v25  ;;  %v1921_v28 = vmul.f32 %v3574_v23, %v3574_v23 }
 0x2ef   : > { %v1451_v29 = vpop.f32.mrf.mxu0 }
 0x2f0   : > { %v1757_v31 = vadd.f32 %v1756_v5, %v1451_v29  ;;  %1955 = vadd.xlane.f32.xlu0 %v1921_v28  ;;  %v3584_v33 = vadd.f32 %v3569_v19, %v1765_v27  ;;  %v1919_v36 = vmul.f32 %v3577_v26, %v3577_v26 }
 0x2f1   : > { %v2625_v32 = vpop.f32.mrf.mxu0 }
 0x2f2   : > { %v3587_v34 = vadd.f32 %v3569_v19, %v1757_v31  ;;  %v1778_v35 = vadd.f32 %v2673_v6, %v2625_v32  ;;  %v1922_v44 = vmul.f32 %v3584_v33, %v3584_v33 }
 0x2f3   : > { %v1464_v37 = vpop.f32.mrf.mxu0 }
 0x2f4   : > { %v3594_v39 = vadd.f32 %v3569_v19, %v1778_v35  ;;  %v1770_v40 = vadd.f32 %v1769_v7, %v1464_v37  ;;  %1951 = vadd.xlane.f32.xlu0 %v1919_v36  ;;  %v1920_v41 = vmul.f32 %v3587_v34, %v3587_v34 }
 0x2f5   : > { %v2626_v42 = vpop.f32.mrf.mxu0 }
 0x2f6   : > { %v1781_v43 = vadd.f32 %v2674_v8, %v2626_v42  ;;  %1953 = vadd.xlane.f32.xlu1 %v1920_v41  ;;  %v3603_v47 = vadd.f32 %v3569_v19, %v1770_v40  ;;  %v1925_v50 = vmul.f32 %v3594_v39, %v3594_v39 }
 0x2f7   : > { %v1467_v45 = vpop.f32.mrf.mxu0 }
 0x2f8   : > { %v3606_v48 = vadd.f32 %v3569_v19, %v1781_v43  ;;  %v1773_v49 = vadd.f32 %v1772_v9, %v1467_v45  ;;  %1957 = vadd.xlane.f32.xlu0 %v1922_v44  ;;  %v1923_v59 = vmul.f32 %v3603_v47, %v3603_v47 }
 0x2f9   : > { %v2629_v51 = vpop.f32.mrf.mxu0 }
 0x2fa   : > { %v3611_v52 = vadd.f32 %v3569_v19, %v1773_v49  ;;  %v1794_v53 = vadd.f32 %v2677_v10, %v2629_v51  ;;  %1963 = vadd.xlane.f32.xlu1 %v1925_v50  ;;  %v1926_v54 = vmul.f32 %v3606_v48, %v3606_v48  ;;  %v2690_v10 = vpop.f32.mrf.mxu1 }
 0x2fb   : > { %v1480_v55 = vpop.f32.mrf.mxu0 }
 0x2fc   : > { %v3616_v57 = vadd.f32 %v3569_v19, %v1794_v53  ;;  %v1786_v58 = vadd.f32 %v1785_v11, %v1480_v55  ;;  %1965 = vadd.xlane.f32.xlu0 %v1926_v54  ;;  %v1924_v62 = vmul.f32 %v3611_v52, %v3611_v52  ;;  %v1836_v24 = vpop.f32.mrf.mxu1 }
 0x2fd   : > { %v2630_v60 = vpop.f32.mrf.mxu0 }
 0x2fe   : > { %v1797_v61 = vadd.f32 %v2678_v12, %v2630_v60  ;;  %1959 = vadd.xlane.f32.xlu1 %v1923_v59  ;;  %v3623_v1 = vadd.f32 %v3569_v19, %v1786_v58  ;;  %v1929_v4 = vmul.f32 %v3616_v57, %v3616_v57  ;;  %v2693_v36 = vpop.f32.mrf.mxu1 }
 0x2ff   : > { %v1483_v63 = vpop.f32.mrf.mxu0 }
 0x300   : > { %v3626_v2 = vadd.f32 %v3569_v19, %v1797_v61  ;;  %v1789_v3 = vadd.f32 %v1788_v13, %v1483_v63  ;;  %1961 = vadd.xlane.f32.xlu0 %v1924_v62  ;;  %v1927_v13 = vmul.f32 %v3623_v1, %v3623_v1  ;;  %v1849_v44 = vpop.f32.mrf.mxu1 }
 0x301   : > { %v2633_v5 = vpop.f32.mrf.mxu0 }
 0x302   : > { %v3631_v6 = vadd.f32 %v3569_v19, %v1789_v3  ;;  %v1810_v7 = vadd.f32 %v3558_v14, %v2633_v5  ;;  %1971 = vadd.xlane.f32.xlu1 %v1929_v4  ;;  %v1930_v8 = vmul.f32 %v3626_v2, %v3626_v2  ;;  %v2694_v58 = vpop.f32.mrf.mxu1 }
 0x303   : > { %v1496_v9 = vpop.f32.mrf.mxu0 }
 0x304   : > { %v3637_v11 = vadd.f32 %v3569_v19, %v1810_v7  ;;  %v1802_v12 = vadd.f32 %v3560_v15, %v1496_v9  ;;  %1973 = vadd.xlane.f32.xlu0 %v1930_v8  ;;  %v1928_v14 = vmul.f32 %v3631_v6, %v3631_v6  ;;  %v1852_v3 = vpop.f32.mrf.mxu1 }
 0x305   : > { %v2634_v18 = vpop.f32.mrf.mxu0 }
 0x306   : > { %v1813_v20 = vadd.f32 %v3562_v16, %v2634_v18  ;;  %1967 = vadd.xlane.f32.xlu1 %v1927_v13  ;;  %v3646_v25 = vadd.f32 %v3569_v19, %v1802_v12  ;;  %v1933_v28 = vmul.f32 %v3637_v11, %v3637_v11  ;;  %v2697_v18 = vpop.f32.mrf.mxu1 }
 0x307   : > { %v1499_v21 = vpop.f32.mrf.mxu0 }
 0x308   : > { %v3649_v27 = vadd.f32 %v3569_v19, %v1813_v20  ;;  %v1805_v15 = vadd.f32 %v3564_v17, %v1499_v21  ;;  %1969 = vadd.xlane.f32.xlu0 %v1928_v14  ;;  %v1931_v40 = vmul.f32 %v3646_v25, %v3646_v25 }
 0x309   : > { %v2637_v29 = vpop.f32.mrf.mxu0 }
 0x30a   : > { %v3655_v16 = vadd.f32 %v3569_v19, %v1805_v15  ;;  %v1826_v31 = vadd.f32 %v3571_v22, %v2637_v29  ;;  %1979 = vadd.xlane.f32.xlu1 %v1933_v28  ;;  %v1934_v32 = vmul.f32 %v3649_v27, %v3649_v27  ;;  %v1865_v29 = vpop.f32.mrf.mxu1 }
 0x30b   : > { %v1512_v35 = vpop.f32.mrf.mxu0 }
 0x30c   : > { %v3661_v37 = vadd.f32 %v3569_v19, %v1826_v31  ;;  %v1818_v17 = vadd.f32 %v3581_v30, %v1512_v35  ;;  %1981 = vadd.xlane.f32.xlu0 %v1934_v32  ;;  %v1932_v22 = vmul.f32 %v3655_v16, %v3655_v16 }
 0x30d   : > { %v2638_v41 = vpop.f32.mrf.mxu0 }
 0x30e   : > { %v1829_v42 = vadd.f32 %v3591_v38, %v2638_v41  ;;  %1975 = vadd.xlane.f32.xlu1 %v1931_v40  ;;  %v3670_v45 = vadd.f32 %v3569_v19, %v1818_v17  ;;  %v1937_v50 = vmul.f32 %v3661_v37, %v3661_v37 }
 0x30f   : > { %v1515_v43 = vpop.f32.mrf.mxu0 }
 0x310   : > { %v3673_v49 = vadd.f32 %v3569_v19, %v1829_v42  ;;  %v1821_v30 = vadd.f32 %v3600_v46, %v1515_v43  ;;  %1977 = vadd.xlane.f32.xlu0 %v1932_v22  ;;  %v1935_v46 = vmul.f32 %v3670_v45, %v3670_v45  ;;  %v2698_v22 = vpop.f32.mrf.mxu1 }
 0x311   : > { %v2641_v51 = vpop.f32.mrf.mxu0 }
 0x312   : > { %v3679_v38 = vadd.f32 %v3569_v19, %v1821_v30  ;;  %v1842_v53 = vadd.f32 %v2689_v56, %v2641_v51  ;;  %1987 = vadd.xlane.f32.xlu1 %v1937_v50  ;;  %v1938_v54 = vmul.f32 %v3673_v49, %v3673_v49 }
 0x313   : > { %v1528_v55 = vpop.f32.mrf.mxu0 }
 0x314   : > { %v3684_v59 = vadd.f32 %v3569_v19, %v1842_v53  ;;  %v1834_v60 = vadd.f32 %v1833_v0, %v1528_v55  ;;  %1989 = vadd.xlane.f32.xlu0 %v1938_v54  ;;  %v1936_v56 = vmul.f32 %v3679_v38, %v3679_v38  ;;  %v1868_v55 = vpop.f32.mrf.mxu1 }
 0x315   : > { %v2642_v61 = vpop.f32.mrf.mxu0 }
 0x316   : > { %v1845_v62 = vadd.f32 %v2690_v10, %v2642_v61  ;;  %1983 = vadd.xlane.f32.xlu1 %v1935_v46  ;;  %v3691_v4 = vadd.f32 %v3569_v19, %v1834_v60  ;;  %v1941_v0 = vmul.f32 %v3684_v59, %v3684_v59 }
 0x317   : > { %v1531_v63 = vpop.f32.mrf.mxu0 }
 0x318   : > { %v3694_v5 = vadd.f32 %v3569_v19, %v1845_v62  ;;  %v1837_v7 = vadd.f32 %v1836_v24, %v1531_v63  ;;  %1985 = vadd.xlane.f32.xlu0 %v1936_v56  ;;  %v1939_v21 = vmul.f32 %v3691_v4, %v3691_v4 }
 0x319   : > { %v2645_v8 = vpop.f32.mrf.mxu0 }
 0x31a   : > { %v3699_v9 = vadd.f32 %v3569_v19, %v1837_v7  ;;  %v1858_v10 = vadd.f32 %v2693_v36, %v2645_v8  ;;  %1995 = vadd.xlane.f32.xlu1 %v1941_v0  ;;  %v1942_v12 = vmul.f32 %v3694_v5, %v3694_v5 }
 0x31b   : > { %v1544_v13 = vpop.f32.mrf.mxu0 }
 0x31c   : > { %v3704_v20 = vadd.f32 %v3569_v19, %v1858_v10  ;;  %v1850_v14 = vadd.f32 %v1849_v44, %v1544_v13  ;;  %1997 = vadd.xlane.f32.xlu0 %v1942_v12  ;;  %v1940_v28 = vmul.f32 %v3699_v9, %v3699_v9 }
 0x31d   : > { %v2646_v24 = vpop.f32.mrf.mxu0 }
 0x31e   : > { %v1861_v15 = vadd.f32 %v2694_v58, %v2646_v24  ;;  %1991 = vadd.xlane.f32.xlu1 %v1939_v21  ;;  %v3711_v32 = vadd.f32 %v3569_v19, %v1850_v14  ;;  %v1945_v17 = vmul.f32 %v3704_v20, %v3704_v20 }
 0x31f   : > { %v1547_v31 = vpop.f32.mrf.mxu0 }
 0x320   : > { %v3714_v35 = vadd.f32 %v3569_v19, %v1861_v15  ;;  %v1853_v36 = vadd.f32 %v1852_v3, %v1547_v31  ;;  %1993 = vadd.xlane.f32.xlu0 %v1940_v28  ;;  %v1943_v50 = vmul.f32 %v3711_v32, %v3711_v32 }
 0x321   : > { %v2649_v40 = vpop.f32.mrf.mxu0 }
 0x322   : > { %v3719_v41 = vadd.f32 %v3569_v19, %v1853_v36  ;;  %2003 = vadd.xlane.f32.xlu1 %v1945_v17  ;;  %v1946_v42 = vmul.f32 %v3714_v35, %v3714_v35  ;;  %v1874_v44 = vadd.f32 %v2697_v18, %v2649_v40 }
 0x323   : > { %v1560_v43 = vpop.f32.mrf.mxu0 }
 0x324   : > { %v1866_v30 = vadd.f32 %v1865_v29, %v1560_v43  ;;  %2005 = vadd.xlane.f32.xlu0 %v1946_v42  ;;  %v1944_v54 = vmul.f32 %v3719_v41, %v3719_v41  ;;  %v3731_v60 = vadd.f32 %v3569_v19, %v1874_v44 }
 0x325   : > { %v2650_v51 = vpop.f32.mrf.mxu0 }
 0x326   : > { %v3726_v53 = vadd.f32 %v3569_v19, %v1866_v30  ;;  %1999 = vadd.xlane.f32.xlu1 %v1943_v50  ;;  %v1877_v46 = vadd.f32 %v2698_v22, %v2650_v51  ;;  %v1949_v3 = vmul.f32 %v3731_v60, %v3731_v60 }
 0x327   : > { %v1563_v58 = vpop.f32.mrf.mxu0 }
 0x328   : > { %v1869_v61 = vadd.f32 %v1868_v55, %v1563_v58  ;;  %2001 = vadd.xlane.f32.xlu0 %v1944_v54  ;;  %v1947_v62 = vmul.f32 %v3726_v53, %v3726_v53  ;;  %v3739_v63 = vadd.f32 %v3569_v19, %v1877_v46 }
 0x32a   : > { %v3736_v56 = vadd.f32 %v3569_v19, %v1869_v61  ;;  %2007 = vadd.xlane.f32.xlu1 %v1947_v62  ;;  %v1950_v0 = vmul.f32 %v3739_v63, %v3739_v63 }
 0x32c   : > { %v1948_v7 = vmul.f32 %v3736_v56, %v3736_v56 }
 0x32e   : > { %2011 = vadd.xlane.f32.xlu1 %v1949_v3  ;;  %2009 = vadd.xlane.f32.xlu0 %v1948_v7 }
 0x332   : > { %2013 = vadd.xlane.f32.xlu0 %v1950_v0 }
 0x379   : > { %v1956_v8 = vpop.xlane.xlu0 %1955 }
 0x37a   : > { %v2017_v10 = vmax.f32 %v1956_v8, 1e-24 }
 0x37c   : > { %2945 = vrsqrt.f32 %v2017_v10 }
 0x37d   : > { %v1952_v12 = vpop.xlane.xlu0 %1951 }
 0x37e   : > { %v2015_v13 = vmax.f32 %v1952_v12, 1e-24 }
 0x37f   : > { %v1954_v18 = vpop.xlane.xlu1 %1953 }
 0x380   : > { %2947 = vrsqrt.f32 %v2015_v13  ;;  %v2016_v19 = vmax.f32 %v1954_v18, 1e-24 }
 0x381   : > { %v1958_v14 = vpop.xlane.xlu0 %1957 }
 0x382   : > { %2949 = vrsqrt.f32 %v2016_v19  ;;  %v2018_v21 = vmax.f32 %v1958_v14, 1e-24 }
 0x383   : > { %v1964_v24 = vpop.xlane.xlu1 %1963 }
 0x384   : > { %2951 = vrsqrt.f32 %v2018_v21  ;;  %v2021_v15 = vmax.f32 %v1964_v24, 1e-24 }
 0x385   : > { %v1966_v28 = vpop.xlane.xlu0 %1965 }
 0x386   : > { %2953 = vrsqrt.f32 %v2021_v15  ;;  %v2022_v29 = vmax.f32 %v1966_v28, 1e-24 }
 0x387   : > { %v1960_v31 = vpop.xlane.xlu1 %1959 }
 0x388   : > { %2955 = vrsqrt.f32 %v2022_v29  ;;  %v2019_v36 = vmax.f32 %v1960_v31, 1e-24 }
 0x389   : > { %v2946_v17 = vpop.eup %2945  ;;  %v1962_v40 = vpop.xlane.xlu0 %1961 }
 0x38a   : > { %v2081_v42 = vmul.f32 %v2946_v17, %v3574_v23  ;;  %2957 = vrsqrt.f32 %v2019_v36  ;;  %v2020_v22 = vmax.f32 %v1962_v40, 1e-24 }
 0x38b   : > { %v1972_v43 = vpop.xlane.xlu1 %1971 }
 0x38c   : > { %v2113_v44 = vmax.f32 %v2081_v42, 0.0  ;;  %2959 = vrsqrt.f32 %v2020_v22  ;;  %v2025_v30 = vmax.f32 %v1972_v43, 1e-24 }
 0x38d   : > { %v2948_v50 = vpop.eup %2947  ;;  %v1974_v51 = vpop.xlane.xlu0 %1973 }
 0x38e   : > { %2145 = vst [vmem:[%s3458_s30 + $0x10] sm:$0xff] %v2113_v44  ;;  %v2079_v54 = vmul.f32 %v2948_v50, %v3577_v26  ;;  %2961 = vrsqrt.f32 %v2025_v30  ;;  %v2026_v55 = vmax.f32 %v1974_v51, 1e-24 }
 0x38f   : > { %v2950_v58 = vpop.eup %2949  ;;  %v1968_v46 = vpop.xlane.xlu1 %1967 }
 0x390   : > { %v2111_v61 = vmax.f32 %v2079_v54, 0.0  ;;  %v2080_v23 = vmul.f32 %v2950_v58, %v3587_v34  ;;  %2963 = vrsqrt.f32 %v2026_v55  ;;  %v2023_v62 = vmax.f32 %v1968_v46, 1e-24 }
 0x391   : > { %v2952_v3 = vpop.eup %2951  ;;  %v1970_v7 = vpop.xlane.xlu0 %1969 }
 0x392   : > { %2143 = vst [vmem:[%s3458_s30] sm:$0xff] %v2111_v61  ;;  %v2112_v0 = vmax.f32 %v2080_v23, 0.0  ;;  %v2082_v8 = vmul.f32 %v2952_v3, %v3584_v33  ;;  %2965 = vrsqrt.f32 %v2023_v62  ;;  %v2024_v10 = vmax.f32 %v1970_v7, 1e-24 }
 0x393   : > { %v2954_v26 = vpop.eup %2953  ;;  %v1980_v12 = vpop.xlane.xlu1 %1979 }
 0x394   : > { %2144 = vst [vmem:[%s3458_s30 + $0x8] sm:$0xff] %v2112_v0  ;;  %v2114_v13 = vmax.f32 %v2082_v8, 0.0  ;;  %v2085_v18 = vmul.f32 %v2954_v26, %v3594_v39  ;;  %2967 = vrsqrt.f32 %v2024_v10  ;;  %v2029_v34 = vmax.f32 %v1980_v12, 1e-24 }
 0x395   : > { %v2956_v19 = vpop.eup %2955  ;;  %v1982_v14 = vpop.xlane.xlu0 %1981 }
 0x396   : > { %2146 = vst [vmem:[%s3458_s30 + $0x18] sm:$0xff] %v2114_v13  ;;  %v2117_v21 = vmax.f32 %v2085_v18, 0.0  ;;  %v2086_v24 = vmul.f32 %v2956_v19, %v3606_v48  ;;  %2969 = vrsqrt.f32 %v2029_v34  ;;  %v2030_v33 = vmax.f32 %v1982_v14, 1e-24 }
 0x397   : > { %v2958_v15 = vpop.eup %2957  ;;  %v1976_v28 = vpop.xlane.xlu1 %1975 }
 0x398   : > { %2149 = vst [vmem:[%s3458_s30 + $0x30] sm:$0xff] %v2117_v21  ;;  %v2118_v29 = vmax.f32 %v2086_v24, 0.0  ;;  %v2083_v31 = vmul.f32 %v2958_v15, %v3603_v47  ;;  %2971 = vrsqrt.f32 %v2030_v33  ;;  %v2027_v39 = vmax.f32 %v1976_v28, 1e-24 }
 0x399   : > { %v2960_v36 = vpop.eup %2959  ;;  %v1978_v17 = vpop.xlane.xlu0 %1977 }
 0x39a   : > { %2150 = vst [vmem:[%s3458_s30 + $0x38] sm:$0xff] %v2118_v29  ;;  %v2115_v40 = vmax.f32 %v2083_v31, 0.0  ;;  %v2084_v42 = vmul.f32 %v2960_v36, %v3611_v52  ;;  %2973 = vrsqrt.f32 %v2027_v39  ;;  %v2028_v48 = vmax.f32 %v1978_v17, 1e-24 }
 0x39b   : > { %v2962_v22 = vpop.eup %2961  ;;  %v1988_v43 = vpop.xlane.xlu1 %1987 }
 0x39c   : > { %2147 = vst [vmem:[%s3458_s30 + $0x20] sm:$0xff] %v2115_v40  ;;  %v2116_v44 = vmax.f32 %v2084_v42, 0.0  ;;  %v2089_v30 = vmul.f32 %v2962_v22, %v3616_v57  ;;  %2975 = vrsqrt.f32 %v2028_v48  ;;  %v2033_v47 = vmax.f32 %v1988_v43, 1e-24 }
 0x39d   : > { %v2964_v50 = vpop.eup %2963  ;;  %v1990_v51 = vpop.xlane.xlu0 %1989 }
 0x39e   : > { %2148 = vst [vmem:[%s3458_s30 + $0x28] sm:$0xff] %v2116_v44  ;;  %v2121_v54 = vmax.f32 %v2089_v30, 0.0  ;;  %v2090_v55 = vmul.f32 %v2964_v50, %v3626_v2  ;;  %2977 = vrsqrt.f32 %v2033_v47  ;;  %v2034_v52 = vmax.f32 %v1990_v51, 1e-24 }
 0x39f   : > { %v2966_v58 = vpop.eup %2965  ;;  %v1984_v46 = vpop.xlane.xlu1 %1983 }
 0x3a0   : > { %2153 = vst [vmem:[%s3458_s30 + $0x50] sm:$0xff] %v2121_v54  ;;  %v2122_v61 = vmax.f32 %v2090_v55, 0.0  ;;  %v2087_v23 = vmul.f32 %v2966_v58, %v3623_v1  ;;  %2979 = vrsqrt.f32 %v2034_v52  ;;  %v2031_v57 = vmax.f32 %v1984_v46, 1e-24 }
 0x3a1   : > { %v2968_v62 = vpop.eup %2967  ;;  %v1986_v3 = vpop.xlane.xlu0 %1985 }
 0x3a2   : > { %2154 = vst [vmem:[%s3458_s30 + $0x58] sm:$0xff] %v2122_v61  ;;  %v2119_v7 = vmax.f32 %v2087_v23, 0.0  ;;  %v2088_v0 = vmul.f32 %v2968_v62, %v3631_v6  ;;  %2981 = vrsqrt.f32 %v2031_v57  ;;  %v2032_v2 = vmax.f32 %v1986_v3, 1e-24 }
 0x3a3   : > { %v2970_v8 = vpop.eup %2969  ;;  %v1996_v10 = vpop.xlane.xlu1 %1995 }
 0x3a4   : > { %2151 = vst [vmem:[%s3458_s30 + $0x40] sm:$0xff] %v2119_v7  ;;  %v2120_v26 = vmax.f32 %v2088_v0, 0.0  ;;  %v2093_v12 = vmul.f32 %v2970_v8, %v3637_v11  ;;  %2983 = vrsqrt.f32 %v2032_v2  ;;  %v2037_v1 = vmax.f32 %v1996_v10, 1e-24 }
 0x3a5   : > { %v2972_v13 = vpop.eup %2971  ;;  %v1998_v18 = vpop.xlane.xlu0 %1997 }
 0x3a6   : > { %2152 = vst [vmem:[%s3458_s30 + $0x48] sm:$0xff] %v2120_v26  ;;  %v2125_v34 = vmax.f32 %v2093_v12, 0.0  ;;  %v2094_v19 = vmul.f32 %v2972_v13, %v3649_v27  ;;  %2985 = vrsqrt.f32 %v2037_v1  ;;  %v2038_v6 = vmax.f32 %v1998_v18, 1e-24 }
 0x3a7   : > { %v2974_v14 = vpop.eup %2973  ;;  %v1992_v21 = vpop.xlane.xlu1 %1991 }
 0x3a8   : > { %2157 = vst [vmem:[%s3458_s30 + $0x70] sm:$0xff] %v2125_v34  ;;  %v2126_v24 = vmax.f32 %v2094_v19, 0.0  ;;  %v2091_v33 = vmul.f32 %v2974_v14, %v3646_v25  ;;  %2987 = vrsqrt.f32 %v2038_v6  ;;  %v2035_v11 = vmax.f32 %v1992_v21, 1e-24 }
 0x3a9   : > { %v2976_v15 = vpop.eup %2975  ;;  %v1994_v28 = vpop.xlane.xlu0 %1993 }
 0x3aa   : > { %2158 = vst [vmem:[%s3458_s30 + $0x78] sm:$0xff] %v2126_v24  ;;  %v2123_v29 = vmax.f32 %v2091_v33, 0.0  ;;  %v2092_v31 = vmul.f32 %v2976_v15, %v3655_v16  ;;  %2989 = vrsqrt.f32 %v2035_v11  ;;  %v2036_v27 = vmax.f32 %v1994_v28, 1e-24 }
 0x3ab   : > { %v2978_v39 = vpop.eup %2977  ;;  %v2004_v36 = vpop.xlane.xlu1 %2003 }
 0x3ac   : > { %2155 = vst [vmem:[%s3458_s30 + $0x60] sm:$0xff] %v2123_v29  ;;  %v2124_v17 = vmax.f32 %v2092_v31, 0.0  ;;  %v2097_v40 = vmul.f32 %v2978_v39, %v3661_v37  ;;  %2991 = vrsqrt.f32 %v2036_v27  ;;  %v2041_v25 = vmax.f32 %v2004_v36, 1e-24 }
 0x3ad   : > { %v2980_v42 = vpop.eup %2979  ;;  %v2006_v48 = vpop.xlane.xlu0 %2005 }
 0x3ae   : > { %2156 = vst [vmem:[%s3458_s30 + $0x68] sm:$0xff] %v2124_v17  ;;  %v2129_v22 = vmax.f32 %v2097_v40, 0.0  ;;  %v2098_v43 = vmul.f32 %v2980_v42, %v3673_v49  ;;  %2993 = vrsqrt.f32 %v2041_v25  ;;  %v2042_v16 = vmax.f32 %v2006_v48, 1e-24 }
 0x3af   : > { %v2982_v44 = vpop.eup %2981  ;;  %v2000_v30 = vpop.xlane.xlu1 %1999 }
 0x3b0   : > { %2161 = vst [vmem:[%s3458_s30 + $0x90] sm:$0xff] %v2129_v22  ;;  %v2130_v47 = vmax.f32 %v2098_v43, 0.0  ;;  %v2095_v50 = vmul.f32 %v2982_v44, %v3670_v45  ;;  %2995 = vrsqrt.f32 %v2042_v16  ;;  %v2039_v37 = vmax.f32 %v2000_v30, 1e-24 }
 0x3b1   : > { %v2984_v51 = vpop.eup %2983  ;;  %v2002_v54 = vpop.xlane.xlu0 %2001 }
 0x3b2   : > { %2162 = vst [vmem:[%s3458_s30 + $0x98] sm:$0xff] %v2130_v47  ;;  %v2127_v55 = vmax.f32 %v2095_v50, 0.0  ;;  %v2096_v52 = vmul.f32 %v2984_v51, %v3679_v38  ;;  %2997 = vrsqrt.f32 %v2039_v37  ;;  %v2040_v49 = vmax.f32 %v2002_v54, 1e-24 }
 0x3b3   : > { %v2986_v58 = vpop.eup %2985  ;;  %v2008_v46 = vpop.xlane.xlu1 %2007 }
 0x3b4   : > { %2159 = vst [vmem:[%s3458_s30 + $0x80] sm:$0xff] %v2127_v55  ;;  %v2128_v61 = vmax.f32 %v2096_v52, 0.0  ;;  %v2101_v23 = vmul.f32 %v2986_v58, %v3684_v59  ;;  %2999 = vrsqrt.f32 %v2040_v49  ;;  %v2043_v45 = vmax.f32 %v2008_v46, 1e-24 }
 0x3b5   : > { %v2988_v57 = vpop.eup %2987 }
 0x3b6   : > { %2160 = vst [vmem:[%s3458_s30 + $0x88] sm:$0xff] %v2128_v61  ;;  %v2133_v62 = vmax.f32 %v2101_v23, 0.0  ;;  %v2102_v3 = vmul.f32 %v2988_v57, %v3694_v5  ;;  %3001 = vrsqrt.f32 %v2043_v45 }
 0x3b7   : > { %v2990_v7 = vpop.eup %2989  ;;  %v2012_v38 = vpop.xlane.xlu1 %2011 }
 0x3b8   : > { %v2010_v0 = vpop.xlane.xlu0 %2009  ;;  %2165 = vst [vmem:[%s3458_s30 + $0xb0] sm:$0xff] %v2133_v62  ;;  %v2134_v2 = vmax.f32 %v2102_v3, 0.0  ;;  %v2099_v8 = vmul.f32 %v2990_v7, %v3691_v4  ;;  %v2045_v10 = vmax.f32 %v2012_v38, 1e-24 }
 0x3b9   : > { %v2044_v59 = vmax.f32 %v2010_v0, 1e-24  ;;  %v2992_v26 = vpop.eup %2991 }
 0x3ba   : > { %2166 = vst [vmem:[%s3458_s30 + $0xb8] sm:$0xff] %v2134_v2  ;;  %v2131_v12 = vmax.f32 %v2099_v8, 0.0  ;;  %v2100_v1 = vmul.f32 %v2992_v26, %v3699_v9  ;;  %3003 = vrsqrt.f32 %v2045_v10 }
 0x3bb   : > { %v2994_v5 = vpop.eup %2993  ;;  %3005 = vrsqrt.f32 %v2044_v59 }
 0x3bc   : > { %v2014_v13 = vpop.xlane.xlu0 %2013  ;;  %2163 = vst [vmem:[%s3458_s30 + $0xa0] sm:$0xff] %v2131_v12  ;;  %v2132_v18 = vmax.f32 %v2100_v1, 0.0  ;;  %v2105_v34 = vmul.f32 %v2994_v5, %v3704_v20 }
 0x3bd   : > { %v2046_v4 = vmax.f32 %v2014_v13, 1e-24  ;;  %v2996_v19 = vpop.eup %2995 }
 0x3be   : > { %2164 = vst [vmem:[%s3458_s30 + $0xa8] sm:$0xff] %v2132_v18  ;;  %v2137_v6 = vmax.f32 %v2105_v34, 0.0  ;;  %v2106_v14 = vmul.f32 %v2996_v19, %v3714_v35 }
 0x3bf   : > { %3007 = vrsqrt.f32 %v2046_v4  ;;  %v2998_v21 = vpop.eup %2997 }
 0x3c0   : > { %2169 = vst [vmem:[%s3458_s30 + $0xd0] sm:$0xff] %v2137_v6  ;;  %v2138_v9 = vmax.f32 %v2106_v14, 0.0  ;;  %v2103_v24 = vmul.f32 %v2998_v21, %v3711_v32 }
 0x3c1   : > { %v3000_v33 = vpop.eup %2999 }
 0x3c2   : > { %2170 = vst [vmem:[%s3458_s30 + $0xd8] sm:$0xff] %v2138_v9  ;;  %v2135_v11 = vmax.f32 %v2103_v24, 0.0  ;;  %v2104_v20 = vmul.f32 %v3000_v33, %v3719_v41 }
 0x3c3   : > { %v3002_v15 = vpop.eup %3001 }
 0x3c4   : > { %2167 = vst [vmem:[%s3458_s30 + $0xc0] sm:$0xff] %v2135_v11  ;;  %v2136_v28 = vmax.f32 %v2104_v20, 0.0  ;;  %v2107_v35 = vmul.f32 %v3002_v15, %v3726_v53 }
 0x3c6   : > { %2168 = vst [vmem:[%s3458_s30 + $0xc8] sm:$0xff] %v2136_v28  ;;  %v2139_v29 = vmax.f32 %v2107_v35, 0.0 }
 0x3c7   : > { %v3004_v31 = vpop.eup %3003 }
 0x3c8   : > { %v3006_v27 = vpop.eup %3005  ;;  %2171 = vst [vmem:[%s3458_s30 + $0xe0] sm:$0xff] %v2139_v29  ;;  %v2109_v32 = vmul.f32 %v3004_v31, %v3731_v60 }
 0x3c9   : > { %v2108_v39 = vmul.f32 %v3006_v27, %v3736_v56 }
 0x3ca   : > { %v2141_v36 = vmax.f32 %v2109_v32, 0.0 }
 0x3cb   : > { %v2140_v40 = vmax.f32 %v2108_v39, 0.0 }
 0x3cc   : > { %v3008_v17 = vpop.eup %3007  ;;  %2173 = vst [vmem:[%s3458_s30 + $0xf0] sm:$0xff] %v2141_v36 }
 0x3cd   : > { %v2110_v41 = vmul.f32 %v3008_v17, %v3739_v63  ;;  %2172 = vst [vmem:[%s3458_s30 + $0xe8] sm:$0xff] %v2140_v40 }
 0x3cf   : > { %v2142_v25 = vmax.f32 %v2110_v41, 0.0 }
 0x3d1   : > { %2174 = vst [vmem:[%s3458_s30 + $0xf8] sm:$0xff] %v2142_v25 }
 0x3d2 PF: > { %s3939_s22 = sld [smem:[#allocation17_spill]]  ;;  %s2442_s18 = sshll.u32 %s3201_s8, 12 }
 0x3d3   : > { %s3940_s17 = sld [smem:[#allocation26_spill]]  ;;  %s2189_s4 = sshll.u32 %s3458_s30, 4  ;;  %s3818_s4 = int_to_ptr.vmem [resolvable:$true] %s2189_s4 }
 0x3d4   : > { %s3941_s15 = sand.u32 1, %s3177_s25   ;;  %s3089_s11 = scalar_lea.vmem %s3818_s4, 4096 }
 0x3d5   : > { %s3822_s7 = scalar_lea.sflag [#allocation5], %s3941_s15  ;;  %p3090_p13 = scmp.ne.s32.totalorder %s3818_s4, %s3089_s11 }
 0x3d6   : > { %s3225_s8 = smov [#allocation9]  }
 0x3d7   : > { %s3093_s5 = sshll.u32 %s3225_s8, 4  ;;  %s3094_s5 = int_to_ptr.vmem [resolvable:$false] %s3093_s5 }
 0x3d8   : > { %p3942_p1 = scmp.ne.s32.totalorder %s3939_s22, 0  ;;  %s3095_s3 = scalar_lea.vmem %s3094_s5, 8192 }
 0x3d9   : > { %s3815_s13 = scalar_lea.hbm %s3940_s17, %s2442_s18  ;;  %p3096_p9 = scmp.lt.s32.totalorder %s3818_s4, %s3094_s5 }
 0x3da   : > { %p3091_p4 = pnand %p3090_p13, %p3942_p1  ;;  %p3097_p11 = scmp.lt.s32.totalorder %s3095_s3, %s3089_s11 }
 0x3dc   : > { %p3092_p2 = pneg %p3091_p4  ;;  %p3098_p12 = por %p3097_p11, %p3096_p9 }
 0x3de   : > { %p3099_p10 = pnand %p3098_p12, %p3092_p2 }
 0x3e0   : > { %3102 = shalt.err (!%p3099_p10)
}
 0x3e1   : > { %s3103_s30 = scalar_lea.hbm %s3815_s13, 4096  ;;  %s3107_s20 = scalar_lea.hbm %s3940_s17, 8192 }
 0x3e2   : > { %p3104_p3 = scmp.ne.s32.totalorder %s3815_s13, %s3103_s30  ;;  %p3108_p7 = scmp.lt.s32.totalorder %s3815_s13, %s3940_s17 }
 0x3e3   : > { %p3109_p5 = scmp.lt.s32.totalorder %s3107_s20, %s3103_s30 }
 0x3e4   : > { %p3105_p6 = pnand %p3104_p3, %p3942_p1 }
 0x3e5   : > { %p3110_p8 = por %p3109_p5, %p3108_p7 }
 0x3e6   : > { %p3106_p0 = pneg %p3105_p6 }
 0x3e8   : > { %p3111_p13 = pnand %p3110_p8, %p3106_p0 }
 0x3ea   : > { %3114 = shalt.err (!%p3111_p13)
}
 0x3eb   : > { %s3226_s2 = smov 128   ;;  %s3227_s21 = smov 8  }
 0x3ec   : > { %2725 = dma.vmem_to_hbm [thread:$0]  (%p3942_p1), %s3818_s4, 4096, %s3815_s13, %s3822_s7, %s3226_s2, %s3226_s2, %s3227_s21  }
 0x3ed PF: > { %s3943_s12 = sld [smem:[#allocation16_spill]] }
 0x3ee   : > { %s3944_s18 = sld [smem:[#allocation13_spill]] }
 0x3ef   : > { %s3945_s14 = sld [smem:[#allocation18_spill]] }
 0x3f3   : > { %p2747_p4 = scmp.ge.s32.totalorder %s3943_s12, 2 }
 0x3f4   : > { %s2204_s16 = sand.u32 1, %s3944_s18  }
 0x3f5   : > { %p3946_p2 = scmp.ne.s32.totalorder %s3945_s14, 0  ;;  %s2205_s15 = scalar_lea.sflag [#allocation5], %s2204_s16 }
 0x3f7   : > { %p2739_p9 = pnand %p2747_p4, %p3946_p2 }
 0x3f9   : > { %p2740_p11 = pneg %p2739_p9 }
 0x3fb   : > { %3168 = dma.done.wait (%p2740_p11), %s2205_s15, 4096  }
 0x3fc   : > { %3170 = vsyncadd (%p2740_p11), %s2205_s15, 4294963200  ;;  %s24_s11 = sadd.s32 1, %s3943_s12   ;;  %s3947_s30 = sld [smem:[#allocation15_spill]] }
 0x3fd   : > { %p21_p12 = scmp.ge.s32.totalorder %s24_s11, 6   ;;  %s3948_s22 = sld [smem:[#allocation19_spill]] }
 0x3fe   : > { %s3949_s13 = smov %s3964_s24  ;;  %s3950_s24 = smov %s3177_s25 }
 0x3ff   : > { %s3951_s25 = smov %s3181_s26  ;;  %s3952_s26 = smov %s3414_s9 }
 0x400   : > { %s3953_s27 = smov %s3189_s28  ;;  %s3954_s28 = smov %s3193_s29 }
 0x401   : > { %s3955_s29 = smov %s3419_s1  ;;  %s3956_s8 = smov %s3209_s10 }
 0x402   : > { %s3958_s10 = smov %s3949_s13  ;;  %23 = sbr.rel (!%p21_p12) target bundleno = 18 (0x12), region = 118 }
 0x403   : > { %s3957_s9 = smov %s3948_s22 }
 0x407   :  { %2210 = vsyncpa [#allocation4], 1 }
 0x408   :  { %2212 = vsyncpa [#allocation4 + $0x1], 1 }
 0x409   :  { %2213 = vsyncpa [#allocation7], 1 }
 0x40a   :  { %2214 = vsyncpa [#allocation5], 1 }
 0x40b   :  { %2216 = vsyncpa [#allocation5 + $0x1], 1 }

</bundles_post_ra>
